<compile_context>
chip_gen: v7x
topology: tpu7x:2x2x1
jax: 0.10.0
libtpu: 0.0.40
codegen_flags: <defaults>
</compile_context>

<pallas_src>
import jax
import jax.numpy as jnp
from jax.experimental import pallas as pl
from jax.experimental.pallas import tpu as pltpu  # noqa: F401  (TPU backend)


def _sigmoid(z):
    # exp + approx reciprocal both run on the EUP slot; no VPU divide.
    return pl.reciprocal(1.0 + jnp.exp(-z), approx=True)


def _zero_index_map(ndim):
    return lambda: (0,) * ndim


# --------------------------- fused LSTM+FC kernel ----------------------------

def _make_fused_lstm_kernel(num_layers, T, B, H):
    """Ref order (all whole-array VMEM blocks, no grid):
      x_ref,                                  (T*B, D)  time-major, f32
      [w_ih_t, w_hh_t, bias] * num_layers,    (D_in,4H) bf16, (H,4H) bf16, (1,4H) f32
      fc_w_t, fc_b,                           (H, O) bf16, (1, O) f32
      o_ref                                   (B, O) f32
    """

    def kernel(*refs):
        x_ref = refs[0]
        layer_refs = refs[1:1 + 3 * num_layers]
        wfc_ref = refs[1 + 3 * num_layers]
        bfc_ref = refs[2 + 3 * num_layers]
        o_ref = refs[3 + 3 * num_layers]

        hs = x_ref[...]                        # current layer input, (T*B, D_in)
        h_last = None
        for l in range(num_layers):
            wih_ref, whh_ref, b_ref = layer_refs[3 * l: 3 * l + 3]
            whh = whh_ref[...]                 # (H, 4H) bf16, VMEM resident
            bias = b_ref[...]                  # (1, 4H) f32 = b_ih + b_hh

            # ---- hoisted input projection + bias: one matmul per layer ----
            xp = jnp.dot(hs.astype(jnp.bfloat16), wih_ref[...],
                         preferred_element_type=jnp.float32) + bias   # (T*B, 4H)
            step_in = [xp[t * B:(t + 1) * B, :] for t in range(T)]    # (B, 4H) each

            # ---- serial recurrence (static unroll), only h@W_hh on chain ----
            h = jnp.zeros((B, H), jnp.float32)
            c = jnp.zeros((B, H), jnp.float32)
            h_seq = []
            for t in range(T):
                gates = step_in[t] + jnp.dot(
                    h.astype(jnp.bfloat16), whh,
                    preferred_element_type=jnp.float32)               # (B, 4H)
                # Full-vreg activations, then lane slices.
                # PyTorch gate order: i | f | g | o
                sig_all = _sigmoid(gates)
                tanh_all = jnp.tanh(gates)
                i_g = sig_all[:, 0 * H:1 * H]
                f_g = sig_all[:, 1 * H:2 * H]
                g_g = tanh_all[:, 2 * H:3 * H]
                o_g = sig_all[:, 3 * H:4 * H]
                c = f_g * c + i_g * g_g
                h = o_g * jnp.tanh(c)
                if l < num_layers - 1:
                    h_seq.append(h)
            h_last = h                          # h_T of this layer
            if l < num_layers - 1:
                # next layer's time-major input; never leaves VMEM/vregs
                hs = jnp.concatenate(h_seq, axis=0)      # (T*B, H)

        # ---- final Linear on the last layer's last hidden state ----
        o_ref[...] = (jnp.dot(h_last.astype(jnp.bfloat16), wfc_ref[...],
                              preferred_element_type=jnp.float32)
                      + bfc_ref[...]).astype(o_ref.dtype)

    return kernel


def lstm_forward(x, params):
    """x: (B, T, input_dim) batch_first (like the PyTorch module).

    Returns (B, output_dim).  Eval semantics (no dropout).
    """
    B, T, D = x.shape
    layers = params["layers"]
    num_layers = len(layers)
    H = layers[0]["w_hh_t"].shape[0]
    O = params["fc_w_t"].shape[1]

    # Time-major (T*B, D): per-step slices in the kernel are contiguous row
    # blocks.  This transpose of a tiny tensor is free wrapper-side plumbing.
    x_tm = jnp.transpose(x, (1, 0, 2)).reshape(T * B, D)

    inputs = [x_tm]
    for lyr in layers:
        inputs += [lyr["w_ih_t"], lyr["w_hh_t"], lyr["bias"]]
    inputs += [params["fc_w_t"], params["fc_b"]]

    in_specs = [pl.BlockSpec(a.shape, _zero_index_map(a.ndim)) for a in inputs]

    kernel = _make_fused_lstm_kernel(num_layers, T, B, H)

    return pl.pallas_call(
        kernel,
        out_shape=jax.ShapeDtypeStruct((B, O), jnp.float32),
        in_specs=in_specs,
        out_specs=pl.BlockSpec((B, O), _zero_index_map(2)),
    )(*inputs)


# ------------------------------ parameter init -------------------------------

def init_params(key, input_dim, hidden_dim, output_dim, num_layers):
    """Shapes/init mirroring nn.LSTM / nn.Linear (U(-1/sqrt(H), 1/sqrt(H))).

    Returns (kernel_params, ref_params): kernel_params carries bf16 matmul
    weights (f32 biases); ref_params keeps the f32 masters for the reference.
    """
    kparams = {"layers": []}
    rparams = {"layers": []}
    bound = 1.0 / (hidden_dim ** 0.5)
    for l in range(num_layers):
        in_dim = input_dim if l == 0 else hidden_dim
        key, k1, k2, k3, k4 = jax.random.split(key, 5)
        w_ih = jax.random.uniform(k1, (4 * hidden_dim, in_dim), jnp.float32, -bound, bound)
        w_hh = jax.random.uniform(k2, (4 * hidden_dim, hidden_dim), jnp.float32, -bound, bound)
        b_ih = jax.random.uniform(k3, (4 * hidden_dim,), jnp.float32, -bound, bound)
        b_hh = jax.random.uniform(k4, (4 * hidden_dim,), jnp.float32, -bound, bound)
        w_ih_t = w_ih.T                                            # (in_dim, 4H)
        w_hh_t = w_hh.T                                            # (H, 4H)
        bias = (b_ih + b_hh).reshape(1, 4 * hidden_dim)            # (1, 4H)
        kparams["layers"].append({"w_ih_t": w_ih_t.astype(jnp.bfloat16),
                                  "w_hh_t": w_hh_t.astype(jnp.bfloat16),
                                  "bias": bias})
        rparams["layers"].append({"w_ih_t": w_ih_t, "w_hh_t": w_hh_t, "bias": bias})
    key, k1, k2 = jax.random.split(key, 3)
    fc_w = jax.random.uniform(k1, (output_dim, hidden_dim), jnp.float32, -bound, bound)
    fc_b = jax.random.uniform(k2, (output_dim,), jnp.float32, -bound, bound)
    kparams["fc_w_t"] = fc_w.T.astype(jnp.bfloat16)                # (H, O)
    kparams["fc_b"] = fc_b.reshape(1, output_dim)                  # (1, O)
    rparams["fc_w_t"] = fc_w.T
    rparams["fc_b"] = fc_b.reshape(1, output_dim)
    return kparams, rparams


# ----------------------------- pure-JAX reference -----------------------------

def _sigmoid_ref(z):
    return 1.0 / (1.0 + jnp.exp(-z))


def ref_forward(x, params):
    B = x.shape[0]
    seq = jnp.transpose(x, (1, 0, 2))                # (T, B, D)
    for layer in params["layers"]:
        H = layer["w_hh_t"].shape[0]
        h = jnp.zeros((B, H), jnp.float32)
        c = jnp.zeros((B, H), jnp.float32)
        outs = []
        for t in range(seq.shape[0]):
            gates = seq[t] @ layer["w_ih_t"] + h @ layer["w_hh_t"] + layer["bias"]
            i_g = _sigmoid_ref(gates[:, 0 * H:1 * H])
            f_g = _sigmoid_ref(gates[:, 1 * H:2 * H])
            g_g = jnp.tanh(gates[:, 2 * H:3 * H])
            o_g = _sigmoid_ref(gates[:, 3 * H:4 * H])
            c = f_g * c + i_g * g_g
            h = o_g * jnp.tanh(c)
            outs.append(h)
        seq = jnp.stack(outs, axis=0)
    return seq[-1] @ params["fc_w_t"] + params["fc_b"]


# ------------------------------------ main ------------------------------------

if __name__ == "__main__":
    B, T = 2, 8
    INPUT_DIM, HIDDEN_DIM, OUTPUT_DIM, NUM_LAYERS = 16, 32, 4, 2

    key = jax.random.PRNGKey(0)
    key, xkey = jax.random.split(key)
    x = jax.random.normal(xkey, (B, T, INPUT_DIM), dtype=jnp.float32)

    kparams, rparams = init_params(key, INPUT_DIM, HIDDEN_DIM, OUTPUT_DIM, NUM_LAYERS)

    out = lstm_forward(x, kparams)
    jax.block_until_ready(out)
    assert out.shape == (B, OUTPUT_DIM)

    ref = ref_forward(x, rparams)
    err = float(jnp.max(jnp.abs(out - ref)))
    # Tolerance widened vs. the f32-only path: matmuls use bf16 operands
    # (f32 accumulation) and sigmoid uses the EUP approx reciprocal.
    assert jnp.allclose(out, ref, atol=3e-2, rtol=3e-2), f"max abs err {err}"

    print("KERNEL_OK")
</pallas_src>

<mosaic_0001>
module attributes {stable_mosaic.version = 11 : i64} {
  func.func @kernel(%arg0: memref<16x16xf32, #tpu.memory_space<vmem>>, %arg1: memref<16x128xbf16, #tpu.memory_space<vmem>>, %arg2: memref<32x128xbf16, #tpu.memory_space<vmem>>, %arg3: memref<1x128xf32, #tpu.memory_space<vmem>>, %arg4: memref<32x128xbf16, #tpu.memory_space<vmem>>, %arg5: memref<32x128xbf16, #tpu.memory_space<vmem>>, %arg6: memref<1x128xf32, #tpu.memory_space<vmem>>, %arg7: memref<32x4xbf16, #tpu.memory_space<vmem>>, %arg8: memref<1x4xf32, #tpu.memory_space<vmem>>, %arg9: memref<2x4xf32, #tpu.memory_space<vmem>>) attributes {dimension_semantics = [], scalar_prefetch = 0 : i64, scratch_operands = 0 : i64, tpu.core_type = #tpu.core_type<tc>} {
    %c0 = arith.constant 0 : index
    %c0_0 = arith.constant 0 : index
    %0 = vector.load %arg0[%c0, %c0_0] : memref<16x16xf32, #tpu.memory_space<vmem>>, vector<16x16xf32>
    %c0_1 = arith.constant 0 : index
    %c0_2 = arith.constant 0 : index
    %1 = vector.load %arg2[%c0_1, %c0_2] : memref<32x128xbf16, #tpu.memory_space<vmem>>, vector<32x128xbf16>
    %c0_3 = arith.constant 0 : index
    %c0_4 = arith.constant 0 : index
    %2 = vector.load %arg3[%c0_3, %c0_4] : memref<1x128xf32, #tpu.memory_space<vmem>>, vector<1x128xf32>
    %3 = arith.truncf %0 : vector<16x16xf32> to vector<16x16xbf16>
    %c0_5 = arith.constant 0 : index
    %c0_6 = arith.constant 0 : index
    %4 = vector.load %arg1[%c0_5, %c0_6] : memref<16x128xbf16, #tpu.memory_space<vmem>>, vector<16x128xbf16>
    %cst = arith.constant dense<0.000000e+00> : vector<16x128xf32>
    %5 = tpu.matmul %3, %4, %cst {dimension_numbers = #tpu.dot_dimension_numbers<[1], [0], [0], [1], [0, 0, 1, 1], [], []>} : vector<16x16xbf16>, vector<16x128xbf16>, vector<16x128xf32> -> vector<16x128xf32>
    %6 = vector.broadcast %2 : vector<1x128xf32> to vector<16x128xf32>
    %7 = arith.addf %5, %6 : vector<16x128xf32>
    %8 = vector.extract_strided_slice %7 {offsets = [0, 0], sizes = [2, 128], strides = [1, 1]} : vector<16x128xf32> to vector<2x128xf32>
    %9 = vector.extract_strided_slice %7 {offsets = [2, 0], sizes = [2, 128], strides = [1, 1]} : vector<16x128xf32> to vector<2x128xf32>
    %10 = vector.extract_strided_slice %7 {offsets = [4, 0], sizes = [2, 128], strides = [1, 1]} : vector<16x128xf32> to vector<2x128xf32>
    %11 = vector.extract_strided_slice %7 {offsets = [6, 0], sizes = [2, 128], strides = [1, 1]} : vector<16x128xf32> to vector<2x128xf32>
    %12 = vector.extract_strided_slice %7 {offsets = [8, 0], sizes = [2, 128], strides = [1, 1]} : vector<16x128xf32> to vector<2x128xf32>
    %13 = vector.extract_strided_slice %7 {offsets = [10, 0], sizes = [2, 128], strides = [1, 1]} : vector<16x128xf32> to vector<2x128xf32>
    %14 = vector.extract_strided_slice %7 {offsets = [12, 0], sizes = [2, 128], strides = [1, 1]} : vector<16x128xf32> to vector<2x128xf32>
    %15 = vector.extract_strided_slice %7 {offsets = [14, 0], sizes = [2, 128], strides = [1, 1]} : vector<16x128xf32> to vector<2x128xf32>
    %cst_7 = arith.constant 0.000000e+00 : f32
    %16 = vector.broadcast %cst_7 : f32 to vector<2x32xf32>
    %cst_8 = arith.constant 0.000000e+00 : f32
    %17 = vector.broadcast %cst_8 : f32 to vector<2x32xf32>
    %18 = arith.truncf %16 : vector<2x32xf32> to vector<2x32xbf16>
    %cst_9 = arith.constant dense<0.000000e+00> : vector<2x128xf32>
    %19 = tpu.matmul %18, %1, %cst_9 {dimension_numbers = #tpu.dot_dimension_numbers<[1], [0], [0], [1], [0, 0, 1, 1], [], []>} : vector<2x32xbf16>, vector<32x128xbf16>, vector<2x128xf32> -> vector<2x128xf32>
    %20 = arith.addf %8, %19 : vector<2x128xf32>
    %cst_10 = arith.constant 0.000000e+00 : f32
    %21 = vector.broadcast %cst_10 : f32 to vector<2x128xf32>
    %22 = arith.subf %21, %20 : vector<2x128xf32>
    %23 = math.exp %22 : vector<2x128xf32>
    %cst_11 = arith.constant 1.000000e+00 : f32
    %24 = vector.broadcast %cst_11 : f32 to vector<2x128xf32>
    %25 = arith.addf %24, %23 : vector<2x128xf32>
    %26 = tpu.reciprocal %25 {approx = true} : vector<2x128xf32> -> vector<2x128xf32>
    %27 = math.tanh %20 : vector<2x128xf32>
    %28 = vector.extract_strided_slice %26 {offsets = [0, 0], sizes = [2, 32], strides = [1, 1]} : vector<2x128xf32> to vector<2x32xf32>
    %29 = vector.extract_strided_slice %26 {offsets = [0, 32], sizes = [2, 32], strides = [1, 1]} : vector<2x128xf32> to vector<2x32xf32>
    %30 = vector.extract_strided_slice %27 {offsets = [0, 64], sizes = [2, 32], strides = [1, 1]} : vector<2x128xf32> to vector<2x32xf32>
    %31 = vector.extract_strided_slice %26 {offsets = [0, 96], sizes = [2, 32], strides = [1, 1]} : vector<2x128xf32> to vector<2x32xf32>
    %32 = arith.mulf %29, %17 : vector<2x32xf32>
    %33 = arith.mulf %28, %30 : vector<2x32xf32>
    %34 = arith.addf %32, %33 : vector<2x32xf32>
    %35 = math.tanh %34 : vector<2x32xf32>
    %36 = arith.mulf %31, %35 : vector<2x32xf32>
    %37 = arith.truncf %36 : vector<2x32xf32> to vector<2x32xbf16>
    %cst_12 = arith.constant dense<0.000000e+00> : vector<2x128xf32>
    %38 = tpu.matmul %37, %1, %cst_12 {dimension_numbers = #tpu.dot_dimension_numbers<[1], [0], [0], [1], [0, 0, 1, 1], [], []>} : vector<2x32xbf16>, vector<32x128xbf16>, vector<2x128xf32> -> vector<2x128xf32>
    %39 = arith.addf %9, %38 : vector<2x128xf32>
    %cst_13 = arith.constant 0.000000e+00 : f32
    %40 = vector.broadcast %cst_13 : f32 to vector<2x128xf32>
    %41 = arith.subf %40, %39 : vector<2x128xf32>
    %42 = math.exp %41 : vector<2x128xf32>
    %cst_14 = arith.constant 1.000000e+00 : f32
    %43 = vector.broadcast %cst_14 : f32 to vector<2x128xf32>
    %44 = arith.addf %43, %42 : vector<2x128xf32>
    %45 = tpu.reciprocal %44 {approx = true} : vector<2x128xf32> -> vector<2x128xf32>
    %46 = math.tanh %39 : vector<2x128xf32>
    %47 = vector.extract_strided_slice %45 {offsets = [0, 0], sizes = [2, 32], strides = [1, 1]} : vector<2x128xf32> to vector<2x32xf32>
    %48 = vector.extract_strided_slice %45 {offsets = [0, 32], sizes = [2, 32], strides = [1, 1]} : vector<2x128xf32> to vector<2x32xf32>
    %49 = vector.extract_strided_slice %46 {offsets = [0, 64], sizes = [2, 32], strides = [1, 1]} : vector<2x128xf32> to vector<2x32xf32>
    %50 = vector.extract_strided_slice %45 {offsets = [0, 96], sizes = [2, 32], strides = [1, 1]} : vector<2x128xf32> to vector<2x32xf32>
    %51 = arith.mulf %48, %34 : vector<2x32xf32>
    %52 = arith.mulf %47, %49 : vector<2x32xf32>
    %53 = arith.addf %51, %52 : vector<2x32xf32>
    %54 = math.tanh %53 : vector<2x32xf32>
    %55 = arith.mulf %50, %54 : vector<2x32xf32>
    %56 = arith.truncf %55 : vector<2x32xf32> to vector<2x32xbf16>
    %cst_15 = arith.constant dense<0.000000e+00> : vector<2x128xf32>
    %57 = tpu.matmul %56, %1, %cst_15 {dimension_numbers = #tpu.dot_dimension_numbers<[1], [0], [0], [1], [0, 0, 1, 1], [], []>} : vector<2x32xbf16>, vector<32x128xbf16>, vector<2x128xf32> -> vector<2x128xf32>
    %58 = arith.addf %10, %57 : vector<2x128xf32>
    %cst_16 = arith.constant 0.000000e+00 : f32
    %59 = vector.broadcast %cst_16 : f32 to vector<2x128xf32>
    %60 = arith.subf %59, %58 : vector<2x128xf32>
    %61 = math.exp %60 : vector<2x128xf32>
    %cst_17 = arith.constant 1.000000e+00 : f32
    %62 = vector.broadcast %cst_17 : f32 to vector<2x128xf32>
    %63 = arith.addf %62, %61 : vector<2x128xf32>
    %64 = tpu.reciprocal %63 {approx = true} : vector<2x128xf32> -> vector<2x128xf32>
    %65 = math.tanh %58 : vector<2x128xf32>
    %66 = vector.extract_strided_slice %64 {offsets = [0, 0], sizes = [2, 32], strides = [1, 1]} : vector<2x128xf32> to vector<2x32xf32>
    %67 = vector.extract_strided_slice %64 {offsets = [0, 32], sizes = [2, 32], strides = [1, 1]} : vector<2x128xf32> to vector<2x32xf32>
    %68 = vector.extract_strided_slice %65 {offsets = [0, 64], sizes = [2, 32], strides = [1, 1]} : vector<2x128xf32> to vector<2x32xf32>
    %69 = vector.extract_strided_slice %64 {offsets = [0, 96], sizes = [2, 32], strides = [1, 1]} : vector<2x128xf32> to vector<2x32xf32>
    %70 = arith.mulf %67, %53 : vector<2x32xf32>
    %71 = arith.mulf %66, %68 : vector<2x32xf32>
    %72 = arith.addf %70, %71 : vector<2x32xf32>
    %73 = math.tanh %72 : vector<2x32xf32>
    %74 = arith.mulf %69, %73 : vector<2x32xf32>
    %75 = arith.truncf %74 : vector<2x32xf32> to vector<2x32xbf16>
    %cst_18 = arith.constant dense<0.000000e+00> : vector<2x128xf32>
    %76 = tpu.matmul %75, %1, %cst_18 {dimension_numbers = #tpu.dot_dimension_numbers<[1], [0], [0], [1], [0, 0, 1, 1], [], []>} : vector<2x32xbf16>, vector<32x128xbf16>, vector<2x128xf32> -> vector<2x128xf32>
    %77 = arith.addf %11, %76 : vector<2x128xf32>
    %cst_19 = arith.constant 0.000000e+00 : f32
    %78 = vector.broadcast %cst_19 : f32 to vector<2x128xf32>
    %79 = arith.subf %78, %77 : vector<2x128xf32>
    %80 = math.exp %79 : vector<2x128xf32>
    %cst_20 = arith.constant 1.000000e+00 : f32
    %81 = vector.broadcast %cst_20 : f32 to vector<2x128xf32>
    %82 = arith.addf %81, %80 : vector<2x128xf32>
    %83 = tpu.reciprocal %82 {approx = true} : vector<2x128xf32> -> vector<2x128xf32>
    %84 = math.tanh %77 : vector<2x128xf32>
    %85 = vector.extract_strided_slice %83 {offsets = [0, 0], sizes = [2, 32], strides = [1, 1]} : vector<2x128xf32> to vector<2x32xf32>
    %86 = vector.extract_strided_slice %83 {offsets = [0, 32], sizes = [2, 32], strides = [1, 1]} : vector<2x128xf32> to vector<2x32xf32>
    %87 = vector.extract_strided_slice %84 {offsets = [0, 64], sizes = [2, 32], strides = [1, 1]} : vector<2x128xf32> to vector<2x32xf32>
    %88 = vector.extract_strided_slice %83 {offsets = [0, 96], sizes = [2, 32], strides = [1, 1]} : vector<2x128xf32> to vector<2x32xf32>
    %89 = arith.mulf %86, %72 : vector<2x32xf32>
    %90 = arith.mulf %85, %87 : vector<2x32xf32>
    %91 = arith.addf %89, %90 : vector<2x32xf32>
    %92 = math.tanh %91 : vector<2x32xf32>
    %93 = arith.mulf %88, %92 : vector<2x32xf32>
    %94 = arith.truncf %93 : vector<2x32xf32> to vector<2x32xbf16>
    %cst_21 = arith.constant dense<0.000000e+00> : vector<2x128xf32>
    %95 = tpu.matmul %94, %1, %cst_21 {dimension_numbers = #tpu.dot_dimension_numbers<[1], [0], [0], [1], [0, 0, 1, 1], [], []>} : vector<2x32xbf16>, vector<32x128xbf16>, vector<2x128xf32> -> vector<2x128xf32>
    %96 = arith.addf %12, %95 : vector<2x128xf32>
    %cst_22 = arith.constant 0.000000e+00 : f32
    %97 = vector.broadcast %cst_22 : f32 to vector<2x128xf32>
    %98 = arith.subf %97, %96 : vector<2x128xf32>
    %99 = math.exp %98 : vector<2x128xf32>
    %cst_23 = arith.constant 1.000000e+00 : f32
    %100 = vector.broadcast %cst_23 : f32 to vector<2x128xf32>
    %101 = arith.addf %100, %99 : vector<2x128xf32>
    %102 = tpu.reciprocal %101 {approx = true} : vector<2x128xf32> -> vector<2x128xf32>
    %103 = math.tanh %96 : vector<2x128xf32>
    %104 = vector.extract_strided_slice %102 {offsets = [0, 0], sizes = [2, 32], strides = [1, 1]} : vector<2x128xf32> to vector<2x32xf32>
    %105 = vector.extract_strided_slice %102 {offsets = [0, 32], sizes = [2, 32], strides = [1, 1]} : vector<2x128xf32> to vector<2x32xf32>
    %106 = vector.extract_strided_slice %103 {offsets = [0, 64], sizes = [2, 32], strides = [1, 1]} : vector<2x128xf32> to vector<2x32xf32>
    %107 = vector.extract_strided_slice %102 {offsets = [0, 96], sizes = [2, 32], strides = [1, 1]} : vector<2x128xf32> to vector<2x32xf32>
    %108 = arith.mulf %105, %91 : vector<2x32xf32>
    %109 = arith.mulf %104, %106 : vector<2x32xf32>
    %110 = arith.addf %108, %109 : vector<2x32xf32>
    %111 = math.tanh %110 : vector<2x32xf32>
    %112 = arith.mulf %107, %111 : vector<2x32xf32>
    %113 = arith.truncf %112 : vector<2x32xf32> to vector<2x32xbf16>
    %cst_24 = arith.constant dense<0.000000e+00> : vector<2x128xf32>
    %114 = tpu.matmul %113, %1, %cst_24 {dimension_numbers = #tpu.dot_dimension_numbers<[1], [0], [0], [1], [0, 0, 1, 1], [], []>} : vector<2x32xbf16>, vector<32x128xbf16>, vector<2x128xf32> -> vector<2x128xf32>
    %115 = arith.addf %13, %114 : vector<2x128xf32>
    %cst_25 = arith.constant 0.000000e+00 : f32
    %116 = vector.broadcast %cst_25 : f32 to vector<2x128xf32>
    %117 = arith.subf %116, %115 : vector<2x128xf32>
    %118 = math.exp %117 : vector<2x128xf32>
    %cst_26 = arith.constant 1.000000e+00 : f32
    %119 = vector.broadcast %cst_26 : f32 to vector<2x128xf32>
    %120 = arith.addf %119, %118 : vector<2x128xf32>
    %121 = tpu.reciprocal %120 {approx = true} : vector<2x128xf32> -> vector<2x128xf32>
    %122 = math.tanh %115 : vector<2x128xf32>
    %123 = vector.extract_strided_slice %121 {offsets = [0, 0], sizes = [2, 32], strides = [1, 1]} : vector<2x128xf32> to vector<2x32xf32>
    %124 = vector.extract_strided_slice %121 {offsets = [0, 32], sizes = [2, 32], strides = [1, 1]} : vector<2x128xf32> to vector<2x32xf32>
    %125 = vector.extract_strided_slice %122 {offsets = [0, 64], sizes = [2, 32], strides = [1, 1]} : vector<2x128xf32> to vector<2x32xf32>
    %126 = vector.extract_strided_slice %121 {offsets = [0, 96], sizes = [2, 32], strides = [1, 1]} : vector<2x128xf32> to vector<2x32xf32>
    %127 = arith.mulf %124, %110 : vector<2x32xf32>
    %128 = arith.mulf %123, %125 : vector<2x32xf32>
    %129 = arith.addf %127, %128 : vector<2x32xf32>
    %130 = math.tanh %129 : vector<2x32xf32>
    %131 = arith.mulf %126, %130 : vector<2x32xf32>
    %132 = arith.truncf %131 : vector<2x32xf32> to vector<2x32xbf16>
    %cst_27 = arith.constant dense<0.000000e+00> : vector<2x128xf32>
    %133 = tpu.matmul %132, %1, %cst_27 {dimension_numbers = #tpu.dot_dimension_numbers<[1], [0], [0], [1], [0, 0, 1, 1], [], []>} : vector<2x32xbf16>, vector<32x128xbf16>, vector<2x128xf32> -> vector<2x128xf32>
    %134 = arith.addf %14, %133 : vector<2x128xf32>
    %cst_28 = arith.constant 0.000000e+00 : f32
    %135 = vector.broadcast %cst_28 : f32 to vector<2x128xf32>
    %136 = arith.subf %135, %134 : vector<2x128xf32>
    %137 = math.exp %136 : vector<2x128xf32>
    %cst_29 = arith.constant 1.000000e+00 : f32
    %138 = vector.broadcast %cst_29 : f32 to vector<2x128xf32>
    %139 = arith.addf %138, %137 : vector<2x128xf32>
    %140 = tpu.reciprocal %139 {approx = true} : vector<2x128xf32> -> vector<2x128xf32>
    %141 = math.tanh %134 : vector<2x128xf32>
    %142 = vector.extract_strided_slice %140 {offsets = [0, 0], sizes = [2, 32], strides = [1, 1]} : vector<2x128xf32> to vector<2x32xf32>
    %143 = vector.extract_strided_slice %140 {offsets = [0, 32], sizes = [2, 32], strides = [1, 1]} : vector<2x128xf32> to vector<2x32xf32>
    %144 = vector.extract_strided_slice %141 {offsets = [0, 64], sizes = [2, 32], strides = [1, 1]} : vector<2x128xf32> to vector<2x32xf32>
    %145 = vector.extract_strided_slice %140 {offsets = [0, 96], sizes = [2, 32], strides = [1, 1]} : vector<2x128xf32> to vector<2x32xf32>
    %146 = arith.mulf %143, %129 : vector<2x32xf32>
    %147 = arith.mulf %142, %144 : vector<2x32xf32>
    %148 = arith.addf %146, %147 : vector<2x32xf32>
    %149 = math.tanh %148 : vector<2x32xf32>
    %150 = arith.mulf %145, %149 : vector<2x32xf32>
    %151 = arith.truncf %150 : vector<2x32xf32> to vector<2x32xbf16>
    %cst_30 = arith.constant dense<0.000000e+00> : vector<2x128xf32>
    %152 = tpu.matmul %151, %1, %cst_30 {dimension_numbers = #tpu.dot_dimension_numbers<[1], [0], [0], [1], [0, 0, 1, 1], [], []>} : vector<2x32xbf16>, vector<32x128xbf16>, vector<2x128xf32> -> vector<2x128xf32>
    %153 = arith.addf %15, %152 : vector<2x128xf32>
    %cst_31 = arith.constant 0.000000e+00 : f32
    %154 = vector.broadcast %cst_31 : f32 to vector<2x128xf32>
    %155 = arith.subf %154, %153 : vector<2x128xf32>
    %156 = math.exp %155 : vector<2x128xf32>
    %cst_32 = arith.constant 1.000000e+00 : f32
    %157 = vector.broadcast %cst_32 : f32 to vector<2x128xf32>
    %158 = arith.addf %157, %156 : vector<2x128xf32>
    %159 = tpu.reciprocal %158 {approx = true} : vector<2x128xf32> -> vector<2x128xf32>
    %160 = math.tanh %153 : vector<2x128xf32>
    %161 = vector.extract_strided_slice %159 {offsets = [0, 0], sizes = [2, 32], strides = [1, 1]} : vector<2x128xf32> to vector<2x32xf32>
    %162 = vector.extract_strided_slice %159 {offsets = [0, 32], sizes = [2, 32], strides = [1, 1]} : vector<2x128xf32> to vector<2x32xf32>
    %163 = vector.extract_strided_slice %160 {offsets = [0, 64], sizes = [2, 32], strides = [1, 1]} : vector<2x128xf32> to vector<2x32xf32>
    %164 = vector.extract_strided_slice %159 {offsets = [0, 96], sizes = [2, 32], strides = [1, 1]} : vector<2x128xf32> to vector<2x32xf32>
    %165 = arith.mulf %162, %148 : vector<2x32xf32>
    %166 = arith.mulf %161, %163 : vector<2x32xf32>
    %167 = arith.addf %165, %166 : vector<2x32xf32>
    %168 = math.tanh %167 : vector<2x32xf32>
    %169 = arith.mulf %164, %168 : vector<2x32xf32>
    %170 = tpu.concatenate %36, %55, %74, %93, %112, %131, %150, %169 in 0 : vector<2x32xf32>, vector<2x32xf32>, vector<2x32xf32>, vector<2x32xf32>, vector<2x32xf32>, vector<2x32xf32>, vector<2x32xf32>, vector<2x32xf32> -> vector<16x32xf32>
    %c0_33 = arith.constant 0 : index
    %c0_34 = arith.constant 0 : index
    %171 = vector.load %arg5[%c0_33, %c0_34] : memref<32x128xbf16, #tpu.memory_space<vmem>>, vector<32x128xbf16>
    %c0_35 = arith.constant 0 : index
    %c0_36 = arith.constant 0 : index
    %172 = vector.load %arg6[%c0_35, %c0_36] : memref<1x128xf32, #tpu.memory_space<vmem>>, vector<1x128xf32>
    %173 = arith.truncf %170 : vector<16x32xf32> to vector<16x32xbf16>
    %c0_37 = arith.constant 0 : index
    %c0_38 = arith.constant 0 : index
    %174 = vector.load %arg4[%c0_37, %c0_38] : memref<32x128xbf16, #tpu.memory_space<vmem>>, vector<32x128xbf16>
    %cst_39 = arith.constant dense<0.000000e+00> : vector<16x128xf32>
    %175 = tpu.matmul %173, %174, %cst_39 {dimension_numbers = #tpu.dot_dimension_numbers<[1], [0], [0], [1], [0, 0, 1, 1], [], []>} : vector<16x32xbf16>, vector<32x128xbf16>, vector<16x128xf32> -> vector<16x128xf32>
    %176 = vector.broadcast %172 : vector<1x128xf32> to vector<16x128xf32>
    %177 = arith.addf %175, %176 : vector<16x128xf32>
    %178 = vector.extract_strided_slice %177 {offsets = [0, 0], sizes = [2, 128], strides = [1, 1]} : vector<16x128xf32> to vector<2x128xf32>
    %179 = vector.extract_strided_slice %177 {offsets = [2, 0], sizes = [2, 128], strides = [1, 1]} : vector<16x128xf32> to vector<2x128xf32>
    %180 = vector.extract_strided_slice %177 {offsets = [4, 0], sizes = [2, 128], strides = [1, 1]} : vector<16x128xf32> to vector<2x128xf32>
    %181 = vector.extract_strided_slice %177 {offsets = [6, 0], sizes = [2, 128], strides = [1, 1]} : vector<16x128xf32> to vector<2x128xf32>
    %182 = vector.extract_strided_slice %177 {offsets = [8, 0], sizes = [2, 128], strides = [1, 1]} : vector<16x128xf32> to vector<2x128xf32>
    %183 = vector.extract_strided_slice %177 {offsets = [10, 0], sizes = [2, 128], strides = [1, 1]} : vector<16x128xf32> to vector<2x128xf32>
    %184 = vector.extract_strided_slice %177 {offsets = [12, 0], sizes = [2, 128], strides = [1, 1]} : vector<16x128xf32> to vector<2x128xf32>
    %185 = vector.extract_strided_slice %177 {offsets = [14, 0], sizes = [2, 128], strides = [1, 1]} : vector<16x128xf32> to vector<2x128xf32>
    %cst_40 = arith.constant 0.000000e+00 : f32
    %186 = vector.broadcast %cst_40 : f32 to vector<2x32xf32>
    %cst_41 = arith.constant 0.000000e+00 : f32
    %187 = vector.broadcast %cst_41 : f32 to vector<2x32xf32>
    %188 = arith.truncf %186 : vector<2x32xf32> to vector<2x32xbf16>
    %cst_42 = arith.constant dense<0.000000e+00> : vector<2x128xf32>
    %189 = tpu.matmul %188, %171, %cst_42 {dimension_numbers = #tpu.dot_dimension_numbers<[1], [0], [0], [1], [0, 0, 1, 1], [], []>} : vector<2x32xbf16>, vector<32x128xbf16>, vector<2x128xf32> -> vector<2x128xf32>
    %190 = arith.addf %178, %189 : vector<2x128xf32>
    %cst_43 = arith.constant 0.000000e+00 : f32
    %191 = vector.broadcast %cst_43 : f32 to vector<2x128xf32>
    %192 = arith.subf %191, %190 : vector<2x128xf32>
    %193 = math.exp %192 : vector<2x128xf32>
    %cst_44 = arith.constant 1.000000e+00 : f32
    %194 = vector.broadcast %cst_44 : f32 to vector<2x128xf32>
    %195 = arith.addf %194, %193 : vector<2x128xf32>
    %196 = tpu.reciprocal %195 {approx = true} : vector<2x128xf32> -> vector<2x128xf32>
    %197 = math.tanh %190 : vector<2x128xf32>
    %198 = vector.extract_strided_slice %196 {offsets = [0, 0], sizes = [2, 32], strides = [1, 1]} : vector<2x128xf32> to vector<2x32xf32>
    %199 = vector.extract_strided_slice %196 {offsets = [0, 32], sizes = [2, 32], strides = [1, 1]} : vector<2x128xf32> to vector<2x32xf32>
    %200 = vector.extract_strided_slice %197 {offsets = [0, 64], sizes = [2, 32], strides = [1, 1]} : vector<2x128xf32> to vector<2x32xf32>
    %201 = vector.extract_strided_slice %196 {offsets = [0, 96], sizes = [2, 32], strides = [1, 1]} : vector<2x128xf32> to vector<2x32xf32>
    %202 = arith.mulf %199, %187 : vector<2x32xf32>
    %203 = arith.mulf %198, %200 : vector<2x32xf32>
    %204 = arith.addf %202, %203 : vector<2x32xf32>
    %205 = math.tanh %204 : vector<2x32xf32>
    %206 = arith.mulf %201, %205 : vector<2x32xf32>
    %207 = arith.truncf %206 : vector<2x32xf32> to vector<2x32xbf16>
    %cst_45 = arith.constant dense<0.000000e+00> : vector<2x128xf32>
    %208 = tpu.matmul %207, %171, %cst_45 {dimension_numbers = #tpu.dot_dimension_numbers<[1], [0], [0], [1], [0, 0, 1, 1], [], []>} : vector<2x32xbf16>, vector<32x128xbf16>, vector<2x128xf32> -> vector<2x128xf32>
    %209 = arith.addf %179, %208 : vector<2x128xf32>
    %cst_46 = arith.constant 0.000000e+00 : f32
    %210 = vector.broadcast %cst_46 : f32 to vector<2x128xf32>
    %211 = arith.subf %210, %209 : vector<2x128xf32>
    %212 = math.exp %211 : vector<2x128xf32>
    %cst_47 = arith.constant 1.000000e+00 : f32
    %213 = vector.broadcast %cst_47 : f32 to vector<2x128xf32>
    %214 = arith.addf %213, %212 : vector<2x128xf32>
    %215 = tpu.reciprocal %214 {approx = true} : vector<2x128xf32> -> vector<2x128xf32>
    %216 = math.tanh %209 : vector<2x128xf32>
    %217 = vector.extract_strided_slice %215 {offsets = [0, 0], sizes = [2, 32], strides = [1, 1]} : vector<2x128xf32> to vector<2x32xf32>
    %218 = vector.extract_strided_slice %215 {offsets = [0, 32], sizes = [2, 32], strides = [1, 1]} : vector<2x128xf32> to vector<2x32xf32>
    %219 = vector.extract_strided_slice %216 {offsets = [0, 64], sizes = [2, 32], strides = [1, 1]} : vector<2x128xf32> to vector<2x32xf32>
    %220 = vector.extract_strided_slice %215 {offsets = [0, 96], sizes = [2, 32], strides = [1, 1]} : vector<2x128xf32> to vector<2x32xf32>
    %221 = arith.mulf %218, %204 : vector<2x32xf32>
    %222 = arith.mulf %217, %219 : vector<2x32xf32>
    %223 = arith.addf %221, %222 : vector<2x32xf32>
    %224 = math.tanh %223 : vector<2x32xf32>
    %225 = arith.mulf %220, %224 : vector<2x32xf32>
    %226 = arith.truncf %225 : vector<2x32xf32> to vector<2x32xbf16>
    %cst_48 = arith.constant dense<0.000000e+00> : vector<2x128xf32>
    %227 = tpu.matmul %226, %171, %cst_48 {dimension_numbers = #tpu.dot_dimension_numbers<[1], [0], [0], [1], [0, 0, 1, 1], [], []>} : vector<2x32xbf16>, vector<32x128xbf16>, vector<2x128xf32> -> vector<2x128xf32>
    %228 = arith.addf %180, %227 : vector<2x128xf32>
    %cst_49 = arith.constant 0.000000e+00 : f32
    %229 = vector.broadcast %cst_49 : f32 to vector<2x128xf32>
    %230 = arith.subf %229, %228 : vector<2x128xf32>
    %231 = math.exp %230 : vector<2x128xf32>
    %cst_50 = arith.constant 1.000000e+00 : f32
    %232 = vector.broadcast %cst_50 : f32 to vector<2x128xf32>
    %233 = arith.addf %232, %231 : vector<2x128xf32>
    %234 = tpu.reciprocal %233 {approx = true} : vector<2x128xf32> -> vector<2x128xf32>
    %235 = math.tanh %228 : vector<2x128xf32>
    %236 = vector.extract_strided_slice %234 {offsets = [0, 0], sizes = [2, 32], strides = [1, 1]} : vector<2x128xf32> to vector<2x32xf32>
    %237 = vector.extract_strided_slice %234 {offsets = [0, 32], sizes = [2, 32], strides = [1, 1]} : vector<2x128xf32> to vector<2x32xf32>
    %238 = vector.extract_strided_slice %235 {offsets = [0, 64], sizes = [2, 32], strides = [1, 1]} : vector<2x128xf32> to vector<2x32xf32>
    %239 = vector.extract_strided_slice %234 {offsets = [0, 96], sizes = [2, 32], strides = [1, 1]} : vector<2x128xf32> to vector<2x32xf32>
    %240 = arith.mulf %237, %223 : vector<2x32xf32>
    %241 = arith.mulf %236, %238 : vector<2x32xf32>
    %242 = arith.addf %240, %241 : vector<2x32xf32>
    %243 = math.tanh %242 : vector<2x32xf32>
    %244 = arith.mulf %239, %243 : vector<2x32xf32>
    %245 = arith.truncf %244 : vector<2x32xf32> to vector<2x32xbf16>
    %cst_51 = arith.constant dense<0.000000e+00> : vector<2x128xf32>
    %246 = tpu.matmul %245, %171, %cst_51 {dimension_numbers = #tpu.dot_dimension_numbers<[1], [0], [0], [1], [0, 0, 1, 1], [], []>} : vector<2x32xbf16>, vector<32x128xbf16>, vector<2x128xf32> -> vector<2x128xf32>
    %247 = arith.addf %181, %246 : vector<2x128xf32>
    %cst_52 = arith.constant 0.000000e+00 : f32
    %248 = vector.broadcast %cst_52 : f32 to vector<2x128xf32>
    %249 = arith.subf %248, %247 : vector<2x128xf32>
    %250 = math.exp %249 : vector<2x128xf32>
    %cst_53 = arith.constant 1.000000e+00 : f32
    %251 = vector.broadcast %cst_53 : f32 to vector<2x128xf32>
    %252 = arith.addf %251, %250 : vector<2x128xf32>
    %253 = tpu.reciprocal %252 {approx = true} : vector<2x128xf32> -> vector<2x128xf32>
    %254 = math.tanh %247 : vector<2x128xf32>
    %255 = vector.extract_strided_slice %253 {offsets = [0, 0], sizes = [2, 32], strides = [1, 1]} : vector<2x128xf32> to vector<2x32xf32>
    %256 = vector.extract_strided_slice %253 {offsets = [0, 32], sizes = [2, 32], strides = [1, 1]} : vector<2x128xf32> to vector<2x32xf32>
    %257 = vector.extract_strided_slice %254 {offsets = [0, 64], sizes = [2, 32], strides = [1, 1]} : vector<2x128xf32> to vector<2x32xf32>
    %258 = vector.extract_strided_slice %253 {offsets = [0, 96], sizes = [2, 32], strides = [1, 1]} : vector<2x128xf32> to vector<2x32xf32>
    %259 = arith.mulf %256, %242 : vector<2x32xf32>
    %260 = arith.mulf %255, %257 : vector<2x32xf32>
    %261 = arith.addf %259, %260 : vector<2x32xf32>
    %262 = math.tanh %261 : vector<2x32xf32>
    %263 = arith.mulf %258, %262 : vector<2x32xf32>
    %264 = arith.truncf %263 : vector<2x32xf32> to vector<2x32xbf16>
    %cst_54 = arith.constant dense<0.000000e+00> : vector<2x128xf32>
    %265 = tpu.matmul %264, %171, %cst_54 {dimension_numbers = #tpu.dot_dimension_numbers<[1], [0], [0], [1], [0, 0, 1, 1], [], []>} : vector<2x32xbf16>, vector<32x128xbf16>, vector<2x128xf32> -> vector<2x128xf32>
    %266 = arith.addf %182, %265 : vector<2x128xf32>
    %cst_55 = arith.constant 0.000000e+00 : f32
    %267 = vector.broadcast %cst_55 : f32 to vector<2x128xf32>
    %268 = arith.subf %267, %266 : vector<2x128xf32>
    %269 = math.exp %268 : vector<2x128xf32>
    %cst_56 = arith.constant 1.000000e+00 : f32
    %270 = vector.broadcast %cst_56 : f32 to vector<2x128xf32>
    %271 = arith.addf %270, %269 : vector<2x128xf32>
    %272 = tpu.reciprocal %271 {approx = true} : vector<2x128xf32> -> vector<2x128xf32>
    %273 = math.tanh %266 : vector<2x128xf32>
    %274 = vector.extract_strided_slice %272 {offsets = [0, 0], sizes = [2, 32], strides = [1, 1]} : vector<2x128xf32> to vector<2x32xf32>
    %275 = vector.extract_strided_slice %272 {offsets = [0, 32], sizes = [2, 32], strides = [1, 1]} : vector<2x128xf32> to vector<2x32xf32>
    %276 = vector.extract_strided_slice %273 {offsets = [0, 64], sizes = [2, 32], strides = [1, 1]} : vector<2x128xf32> to vector<2x32xf32>
    %277 = vector.extract_strided_slice %272 {offsets = [0, 96], sizes = [2, 32], strides = [1, 1]} : vector<2x128xf32> to vector<2x32xf32>
    %278 = arith.mulf %275, %261 : vector<2x32xf32>
    %279 = arith.mulf %274, %276 : vector<2x32xf32>
    %280 = arith.addf %278, %279 : vector<2x32xf32>
    %281 = math.tanh %280 : vector<2x32xf32>
    %282 = arith.mulf %277, %281 : vector<2x32xf32>
    %283 = arith.truncf %282 : vector<2x32xf32> to vector<2x32xbf16>
    %cst_57 = arith.constant dense<0.000000e+00> : vector<2x128xf32>
    %284 = tpu.matmul %283, %171, %cst_57 {dimension_numbers = #tpu.dot_dimension_numbers<[1], [0], [0], [1], [0, 0, 1, 1], [], []>} : vector<2x32xbf16>, vector<32x128xbf16>, vector<2x128xf32> -> vector<2x128xf32>
    %285 = arith.addf %183, %284 : vector<2x128xf32>
    %cst_58 = arith.constant 0.000000e+00 : f32
    %286 = vector.broadcast %cst_58 : f32 to vector<2x128xf32>
    %287 = arith.subf %286, %285 : vector<2x128xf32>
    %288 = math.exp %287 : vector<2x128xf32>
    %cst_59 = arith.constant 1.000000e+00 : f32
    %289 = vector.broadcast %cst_59 : f32 to vector<2x128xf32>
    %290 = arith.addf %289, %288 : vector<2x128xf32>
    %291 = tpu.reciprocal %290 {approx = true} : vector<2x128xf32> -> vector<2x128xf32>
    %292 = math.tanh %285 : vector<2x128xf32>
    %293 = vector.extract_strided_slice %291 {offsets = [0, 0], sizes = [2, 32], strides = [1, 1]} : vector<2x128xf32> to vector<2x32xf32>
    %294 = vector.extract_strided_slice %291 {offsets = [0, 32], sizes = [2, 32], strides = [1, 1]} : vector<2x128xf32> to vector<2x32xf32>
    %295 = vector.extract_strided_slice %292 {offsets = [0, 64], sizes = [2, 32], strides = [1, 1]} : vector<2x128xf32> to vector<2x32xf32>
    %296 = vector.extract_strided_slice %291 {offsets = [0, 96], sizes = [2, 32], strides = [1, 1]} : vector<2x128xf32> to vector<2x32xf32>
    %297 = arith.mulf %294, %280 : vector<2x32xf32>
    %298 = arith.mulf %293, %295 : vector<2x32xf32>
    %299 = arith.addf %297, %298 : vector<2x32xf32>
    %300 = math.tanh %299 : vector<2x32xf32>
    %301 = arith.mulf %296, %300 : vector<2x32xf32>
    %302 = arith.truncf %301 : vector<2x32xf32> to vector<2x32xbf16>
    %cst_60 = arith.constant dense<0.000000e+00> : vector<2x128xf32>
    %303 = tpu.matmul %302, %171, %cst_60 {dimension_numbers = #tpu.dot_dimension_numbers<[1], [0], [0], [1], [0, 0, 1, 1], [], []>} : vector<2x32xbf16>, vector<32x128xbf16>, vector<2x128xf32> -> vector<2x128xf32>
    %304 = arith.addf %184, %303 : vector<2x128xf32>
    %cst_61 = arith.constant 0.000000e+00 : f32
    %305 = vector.broadcast %cst_61 : f32 to vector<2x128xf32>
    %306 = arith.subf %305, %304 : vector<2x128xf32>
    %307 = math.exp %306 : vector<2x128xf32>
    %cst_62 = arith.constant 1.000000e+00 : f32
    %308 = vector.broadcast %cst_62 : f32 to vector<2x128xf32>
    %309 = arith.addf %308, %307 : vector<2x128xf32>
    %310 = tpu.reciprocal %309 {approx = true} : vector<2x128xf32> -> vector<2x128xf32>
    %311 = math.tanh %304 : vector<2x128xf32>
    %312 = vector.extract_strided_slice %310 {offsets = [0, 0], sizes = [2, 32], strides = [1, 1]} : vector<2x128xf32> to vector<2x32xf32>
    %313 = vector.extract_strided_slice %310 {offsets = [0, 32], sizes = [2, 32], strides = [1, 1]} : vector<2x128xf32> to vector<2x32xf32>
    %314 = vector.extract_strided_slice %311 {offsets = [0, 64], sizes = [2, 32], strides = [1, 1]} : vector<2x128xf32> to vector<2x32xf32>
    %315 = vector.extract_strided_slice %310 {offsets = [0, 96], sizes = [2, 32], strides = [1, 1]} : vector<2x128xf32> to vector<2x32xf32>
    %316 = arith.mulf %313, %299 : vector<2x32xf32>
    %317 = arith.mulf %312, %314 : vector<2x32xf32>
    %318 = arith.addf %316, %317 : vector<2x32xf32>
    %319 = math.tanh %318 : vector<2x32xf32>
    %320 = arith.mulf %315, %319 : vector<2x32xf32>
    %321 = arith.truncf %320 : vector<2x32xf32> to vector<2x32xbf16>
    %cst_63 = arith.constant dense<0.000000e+00> : vector<2x128xf32>
    %322 = tpu.matmul %321, %171, %cst_63 {dimension_numbers = #tpu.dot_dimension_numbers<[1], [0], [0], [1], [0, 0, 1, 1], [], []>} : vector<2x32xbf16>, vector<32x128xbf16>, vector<2x128xf32> -> vector<2x128xf32>
    %323 = arith.addf %185, %322 : vector<2x128xf32>
    %cst_64 = arith.constant 0.000000e+00 : f32
    %324 = vector.broadcast %cst_64 : f32 to vector<2x128xf32>
    %325 = arith.subf %324, %323 : vector<2x128xf32>
    %326 = math.exp %325 : vector<2x128xf32>
    %cst_65 = arith.constant 1.000000e+00 : f32
    %327 = vector.broadcast %cst_65 : f32 to vector<2x128xf32>
    %328 = arith.addf %327, %326 : vector<2x128xf32>
    %329 = tpu.reciprocal %328 {approx = true} : vector<2x128xf32> -> vector<2x128xf32>
    %330 = math.tanh %323 : vector<2x128xf32>
    %331 = vector.extract_strided_slice %329 {offsets = [0, 0], sizes = [2, 32], strides = [1, 1]} : vector<2x128xf32> to vector<2x32xf32>
    %332 = vector.extract_strided_slice %329 {offsets = [0, 32], sizes = [2, 32], strides = [1, 1]} : vector<2x128xf32> to vector<2x32xf32>
    %333 = vector.extract_strided_slice %330 {offsets = [0, 64], sizes = [2, 32], strides = [1, 1]} : vector<2x128xf32> to vector<2x32xf32>
    %334 = vector.extract_strided_slice %329 {offsets = [0, 96], sizes = [2, 32], strides = [1, 1]} : vector<2x128xf32> to vector<2x32xf32>
    %335 = arith.mulf %332, %318 : vector<2x32xf32>
    %336 = arith.mulf %331, %333 : vector<2x32xf32>
    %337 = arith.addf %335, %336 : vector<2x32xf32>
    %338 = math.tanh %337 : vector<2x32xf32>
    %339 = arith.mulf %334, %338 : vector<2x32xf32>
    %340 = arith.truncf %339 : vector<2x32xf32> to vector<2x32xbf16>
    %c0_66 = arith.constant 0 : index
    %c0_67 = arith.constant 0 : index
    %341 = vector.load %arg7[%c0_66, %c0_67] : memref<32x4xbf16, #tpu.memory_space<vmem>>, vector<32x4xbf16>
    %cst_68 = arith.constant dense<0.000000e+00> : vector<2x4xf32>
    %342 = tpu.matmul %340, %341, %cst_68 {dimension_numbers = #tpu.dot_dimension_numbers<[1], [0], [0], [1], [0, 0, 1, 1], [], []>} : vector<2x32xbf16>, vector<32x4xbf16>, vector<2x4xf32> -> vector<2x4xf32>
    %c0_69 = arith.constant 0 : index
    %c0_70 = arith.constant 0 : index
    %343 = vector.load %arg8[%c0_69, %c0_70] : memref<1x4xf32, #tpu.memory_space<vmem>>, vector<1x4xf32>
    %344 = vector.broadcast %343 : vector<1x4xf32> to vector<2x4xf32>
    %345 = arith.addf %342, %344 : vector<2x4xf32>
    %c0_71 = arith.constant 0 : index
    %c0_72 = arith.constant 0 : index
    %346 = vector.load %arg9[%c0_71, %c0_72] : memref<2x4xf32, #tpu.memory_space<vmem>>, vector<2x4xf32>
    tpu.vector_store %arg9[%c0_71, %c0_72], %345 {strides = array<i32>} : memref<2x4xf32, #tpu.memory_space<vmem>>, vector<2x4xf32>,
    return
  }
}

</mosaic_0001>

<bundles_post_ra>
// kernel: tpu_custom_call.1
= control target key start
LH: loop header
LB: loop body
LE: loop exit
PB: predicated region body
PF: predicated region fallthrough
CT: control target
= control target key end

     0   :  { %14 = vsyncpa [#allocation3], 0  ;;  %s2420_s0 = inlined_call_operand.vmem [shape: f32[16,16], index: 0, kind: input, shape index: {}]   ;;  %s2421_s1 = inlined_call_operand.hbm [shape: bf16[16,128], index: 1, kind: input, shape index: {}]   ;;  %s2422_s2 = inlined_call_operand.hbm [shape: bf16[32,128], index: 2, kind: input, shape index: {}]   ;;  %s2423_s3 = inlined_call_operand.vmem [shape: f32[1,128], index: 3, kind: input, shape index: {}]   ;;  %s2424_s4 = inlined_call_operand.vmem [shape: bf16[32,128], index: 4, kind: input, shape index: {}]   ;;  %s2425_s5 = inlined_call_operand.hbm [shape: bf16[32,128], index: 5, kind: input, shape index: {}]   ;;  %s2426_s6 = inlined_call_operand.vmem [shape: f32[1,128], index: 6, kind: input, shape index: {}]   ;;  %s2427_s7 = inlined_call_operand.vmem [shape: bf16[32,4], index: 7, kind: input, shape index: {}]   ;;  %s2428_s8 = inlined_call_operand.vmem [shape: f32[1,4], index: 8, kind: input, shape index: {}]   ;;  %s2429_s9 = inlined_call_operand.hbm [shape: f32[2,4], index: 9, kind: output, shape index: {}]  }
   0x1   :  { %15 = vsyncpa [#allocation6], 0 }
   0x2   :  { %16 = vsyncpa [#allocation4], 0  ;;  %s2029_s30 = smov [#allocation5]   ;;  %s2030_s11 = smov [#allocation2]  }
   0x3   :  { %s36_s10 = sshll.u32 %s2029_s30, 4  ;;  %s24_s12 = sshll.u32 %s2030_s11, 4  ;;  %s37_s10 = int_to_ptr.vmem [resolvable:$true] %s36_s10  ;;  %s2089_s12 = int_to_ptr.vmem [resolvable:$true] %s24_s12 }
   0x4   :  { %s1935_s15 = scalar_lea.hbm %s2422_s2, 256 }
   0x5   :  { %p1936_p0 = scmp.ne.s32.totalorder %s2422_s2, %s1935_s15  ;;  %p1939_p1 = scmp.lt.u32.totalorder %s1935_s15, %s2422_s2 }
   0x7   :  { %p1941_p2 = pnand %p1939_p1, %p1936_p0 }
   0x9   :  { %1944 = shalt.err (!%p1941_p2)
}
   0xa   :  { %s1945_s20 = scalar_lea.vmem %s37_s10, 256  ;;  %p1950_p4 = scmp.lt.s32.totalorder %s37_s10, %s37_s10 }
   0xb   :  { %p1946_p3 = scmp.ne.s32.totalorder %s37_s10, %s1945_s20  ;;  %p1951_p5 = scmp.lt.s32.totalorder %s1945_s20, %s1945_s20 }
   0xd   :  { %p1952_p6 = por %p1951_p5, %p1950_p4 }
   0xf   :  { %p1953_p7 = pnand %p1952_p6, %p1946_p3 }
  0x11   :  { %1956 = shalt.err (!%p1953_p7)
}
  0x12   :  { %s2031_s21 = smov 64   ;;  %s2032_s22 = smov 4  }
  0x13   :  { %42 = dma.hbm_to_vmem [thread:$0]  %s2422_s2, 256, %s37_s10, [#allocation6], %s2031_s21, %s2031_s21, %s2032_s22  }
  0x14   :  { %s1957_s27 = scalar_lea.hbm %s2421_s1, 128 }
  0x15   :  { %p1958_p8 = scmp.ne.s32.totalorder %s2421_s1, %s1957_s27  ;;  %p1961_p9 = scmp.lt.u32.totalorder %s1957_s27, %s2421_s1 }
  0x17   :  { %p1963_p10 = pnand %p1961_p9, %p1958_p8 }
  0x19   :  { %1966 = shalt.err (!%p1963_p10)
}
  0x1a   :  { %s1967_s13 = scalar_lea.vmem %s2089_s12, 128  ;;  %p1972_p12 = scmp.lt.s32.totalorder %s2089_s12, %s2089_s12 }
  0x1b   :  { %p1968_p11 = scmp.ne.s32.totalorder %s2089_s12, %s1967_s13  ;;  %p1973_p13 = scmp.lt.s32.totalorder %s1967_s13, %s1967_s13 }
  0x1d   :  { %p1974_p0 = por %p1973_p13, %p1972_p12 }
  0x1f   :  { %p1975_p1 = pnand %p1974_p0, %p1968_p11 }
  0x21   :  { %1978 = shalt.err (!%p1975_p1)
}
  0x22   :  { %30 = dma.hbm_to_vmem [thread:$0]  %s2421_s1, 128, %s2089_s12, [#allocation3], %s2031_s21, %s2031_s21, %s2032_s22  }
  0x23   :  { %s2033_s14 = smov [#allocation7]   ;;  %s1979_s18 = scalar_lea.hbm %s2425_s5, 256 }
  0x24   :  { %s52_s15 = sshll.u32 %s2033_s14, 4  ;;  %p1980_p2 = scmp.ne.s32.totalorder %s2425_s5, %s1979_s18  ;;  %s53_s15 = int_to_ptr.vmem [resolvable:$true] %s52_s15 }
  0x25   :  { %p1983_p3 = scmp.lt.u32.totalorder %s1979_s18, %s2425_s5 }
  0x27   :  { %p1985_p4 = pnand %p1983_p3, %p1980_p2 }
  0x29   :  { %1988 = shalt.err (!%p1985_p4)
}
  0x2a   :  { %s1989_s25 = scalar_lea.vmem %s53_s15, 256  ;;  %p1994_p6 = scmp.lt.s32.totalorder %s53_s15, %s53_s15 }
  0x2b   :  { %p1990_p5 = scmp.ne.s32.totalorder %s53_s15, %s1989_s25  ;;  %p1995_p7 = scmp.lt.s32.totalorder %s1989_s25, %s1989_s25 }
  0x2d   :  { %p1996_p8 = por %p1995_p7, %p1994_p6 }
  0x2f   :  { %p1997_p9 = pnand %p1996_p8, %p1990_p5 }
  0x31   :  { %2000 = shalt.err (!%p1997_p9)
}
  0x32   :  { %58 = dma.hbm_to_vmem [thread:$0]  %s2425_s5, 256, %s53_s15, [#allocation6], %s2031_s21, %s2031_s21, %s2032_s22  }
  0x33   :  { %2023 = dma.done.wait [#allocation3], 128  }
  0x34   :  { %2024 = vsyncadd [#allocation3], 4294967168 }
  0x35   :  { %2025 = dma.done.wait [#allocation6], 512  }
  0x36   :  { %2026 = vsyncadd [#allocation6], 4294966784  ;;  %v2034_v0 = vmov 0.0   ;;  %vm2035_vm0 = vmmov 0   ;;  %v1798_v1 = vld [vmem:[#allocation2] sm:$0xff]   ;;  %v2147_v2 = vld [vmem:[#allocation5] sm:$0xff]  }
  0x37   :  { %1638 = vmatprep.subr.bf16.mxu0 %v2034_v0  ;;  %1644 = vmatprep.subr.bf16.mxu1 %v2034_v0  ;;  %v75_v3 = vld [vmem:[%s2420_s0] sm:$0xff]  ;;  %v76_v4 = vld [vmem:[%s2420_s0 + $0x8] sm:$0xff]  ;;  %vm97_vm1 = vcmask 130048   ;;  %v2156_v6 = vld [vmem:[#allocation5 + $0x8] sm:$0xff]   ;;  %v2036_v7 = vmov 0   ;;  %vm154_vm2 = vcmask 261120  }
  0x38   :  { %1640 = vmatprep.mubr.msk.bf16.mxu0 %vm2035_vm0, %v2034_v0  ;;  %1648 = vmatprep.mubr.msk.bf16.mxu1 %vm2035_vm0, %v2034_v0  ;;  %v82_v5 = vpack.c.bf16 %v76_v4, %v75_v3  ;;  %v1553_v8 = vld [vmem:[%s2423_s3] ss:$0 sm:$0xff]  ;;  %s2037_s3 = smov 32   ;;  %vm763_vm3 = vcmask 1041408   ;;  %vm765_vm4 = vcmask 1043456   ;;  %vm767_vm5 = vcmask 1045504  }
  0x39   :  { %1639 = vmatpush3.bf16.msra.mxu0 %v1798_v1  ;;  %1645 = vmatpush3.bf16.msra.mxu1 %v2147_v2  ;;  %vm1535_vm6 = vcmask 25600  }
  0x3a   :  { %1652 = vmatprep.subr.bf16.mxu0 %v2034_v0  ;;  %1646 = vmatprep.subr.bf16.mxu1 %v2034_v0 }
  0x3c   :  { %1641 = vmatmul.mubr.msk.bf16.vlgmr.msra.gmra.mrb[0].mxu0 %vm97_vm1, %v82_v5 }
  0x3d   :  { %1653 = vmatpush3.bf16.msra.mxu0 %v2147_v2  ;;  %1656 = vmatprep.mubr.msk.bf16.mxu0 %vm2035_vm0, %v2034_v0 }
  0x3e   :  { %1647 = vmatpush3.bf16.msra.mxu1 %v2156_v6  ;;  %1654 = vmatprep.subr.bf16.mxu0 %v2034_v0 }
  0x3f   :  { %1660 = vmatprep.subr.bf16.mxu1 %v2034_v0 }
  0x41   :  { %1649 = vmatmul.mubr.bf16.vlgmr.msra.gmra.mrb[0].mxu1 %v2036_v7  ;;  %1655 = vmatpush3.bf16.msra.mxu0 %v2156_v6 }
  0x42   :  { %1661 = vmatpush3.bf16.msra.mxu1 %v2147_v2  ;;  %1664 = vmatprep.mubr.msk.bf16.mxu1 %vm2035_vm0, %v2034_v0 }
  0x43   :  { %1662 = vmatprep.subr.bf16.mxu1 %v2034_v0  ;;  %1668 = vmatprep.subr.bf16.mxu0 %v2034_v0 }
  0x46   :  { %1663 = vmatpush3.bf16.msra.mxu1 %v2156_v6 }
  0x47   :  { %1676 = vmatprep.subr.bf16.mxu1 %v2034_v0 }
 0x10f   :  { %v135_v9 = vpop.f32.mrb[0].mxu0 }
 0x110   :  { %v1642_v10 = vpop.f32.mrb[1].mxu0  ;;  %v2178_v11 = vadd.f32 %v1553_v8, %v135_v9 }
 0x111   :  { %v138_v12 = vpop.f32.mrb[2].mxu0 }
 0x112   :  { %v2180_v13 = vadd.f32 %v1553_v8, %v138_v12  ;;  %v1643_v14 = vpop.f32.mrb[3].mxu0 }
 0x114   :  { %v192_v15 = vpop.f32.mrb[0].mxu1 }
 0x115   :  { %v198_v16 = vadd.f32 %v192_v15, %v2178_v11  ;;  %v1650_v17 = vpop.f32.mrb[1].mxu1 }
 0x116   :  { %v195_v18 = vpop.f32.mrb[2].mxu1 }
 0x117   :  { %v1651_v19 = vpop.f32.mrb[3].mxu1  ;;  %1807 = vtanh.f32 %v198_v16  ;;  %v199_v21 = vsub.f32 0.0, %v198_v16 }
 0x119   :  { %v200_v22 = vmul.f32 1.442695, %v199_v21 }
 0x11b   :  { %1809 = vpow2.f32 %v200_v22 }
 0x121   :  { %v1808_v20 = vpop.eup %1807 }
 0x122   :  { %207 = vrot.lane.b32.xlu0 %v1808_v20, %s2031_s21 }
 0x125   :  { %v1810_v23 = vpop.eup %1809 }
 0x126   :  { %v202_v24 = vadd.f32 1.0, %v1810_v23 }
 0x128   :  { %1811 = vrcp.f32 %v202_v24 }
 0x132   :  { %v1812_v25 = vpop.eup %1811 }
 0x133   :  { %v205_v28 = vmul.f32 0.0, %v1812_v25 }
 0x194   :  { %v208_v26 = vpop.permute.xlu0 %207 }
 0x195   :  { %v210_v27 = vmul.f32 %v1812_v25, %v208_v26 }
 0x197   :  { %212 = vrot.lane.b32.xlu0 %v210_v27, %s2037_s3 }
 0x209   :  { %v213_v29 = vpop.permute.xlu0 %212 }
 0x20a   :  { %v215_v30 = vadd.f32 %v213_v29, %v205_v28 }
 0x20c   :  { %1813 = vtanh.f32 %v215_v30  ;;  %v280_v50 = vrot.slane %v215_v30, 6 }
 0x216   :  { %v1814_v31 = vpop.eup %1813 }
 0x217   :  { %218 = vrot.lane.b32.xlu1 %v1814_v31, %s2031_s21 }
 0x289   :  { %v219_v32 = vpop.permute.xlu1 %218 }
 0x28a   :  { %v2186_v33 = vmul.f32 %v1812_v25, %v219_v32 }
 0x28c   :  { %v222_v34 = vpack.c.bf16 %v2186_v33, %v2186_v33 }
 0x28e   :  { %224 = vrot.lane.b32.xlu1 %v222_v34, %s2037_s3 }
 0x300   :  { %v225_v35 = vpop.permute.xlu1 %224 }
 0x301   :  { %1657 = vmatmul.mubr.msk.bf16.vlgmr.msra.gmra.mrb[4].mxu0 %vm154_vm2, %v225_v35 }
 0x302   :  { %1669 = vmatpush3.bf16.msra.mxu0 %v2147_v2  ;;  %1672 = vmatprep.mubr.msk.bf16.mxu0 %vm2035_vm0, %v2034_v0 }
 0x303   :  { %1670 = vmatprep.subr.bf16.mxu0 %v2034_v0 }
 0x306   :  { %1671 = vmatpush3.bf16.msra.mxu0 %v2156_v6 }
 0x307   :  { %1684 = vmatprep.subr.bf16.mxu0 %v2034_v0 }
 0x3d4   :  { %v263_v36 = vpop.f32.mrb[4].mxu0 }
 0x3d5   :  { %v270_v37 = vrot.slane %v263_v36, 6  ;;  %v1658_v38 = vpop.f32.mrb[5].mxu0 }
 0x3d6   :  { %v266_v39 = vpop.f32.mrb[6].mxu0 }
 0x3d7   :  { %v272_v40 = vadd.f32 %v270_v37, %v2178_v11  ;;  %v1659_v41 = vpop.f32.mrb[7].mxu0 }
 0x3d9   :  { %1815 = vtanh.f32 %v272_v40  ;;  %v273_v43 = vsub.f32 0.0, %v272_v40 }
 0x3db   :  { %v274_v44 = vmul.f32 1.442695, %v273_v43 }
 0x3dd   :  { %1817 = vpow2.f32 %v274_v44 }
 0x3e3   :  { %v1816_v42 = vpop.eup %1815 }
 0x3e4   :  { %284 = vrot.lane.b32.xlu0 %v1816_v42, %s2031_s21 }
 0x3e7   :  { %v1818_v45 = vpop.eup %1817 }
 0x3e8   :  { %v276_v46 = vadd.f32 1.0, %v1818_v45 }
 0x3ea   :  { %1819 = vrcp.f32 %v276_v46 }
 0x3f4   :  { %v1820_v47 = vpop.eup %1819 }
 0x3f5   :  { %v282_v51 = vmul.f32 %v1820_v47, %v280_v50 }
 0x456   :  { %v285_v48 = vpop.permute.xlu0 %284 }
 0x457   :  { %v287_v49 = vmul.f32 %v1820_v47, %v285_v48 }
 0x459   :  { %289 = vrot.lane.b32.xlu1 %v287_v49, %s2037_s3 }
 0x4cb   :  { %v290_v52 = vpop.permute.xlu1 %289 }
 0x4cc   :  { %v292_v53 = vadd.f32 %v290_v52, %v282_v51 }
 0x4ce   :  { %1821 = vtanh.f32 %v292_v53  ;;  %v358_v16 = vrot.slane %v292_v53, 6 }
 0x4d8   :  { %v1822_v54 = vpop.eup %1821 }
 0x4d9   :  { %295 = vrot.lane.b32.xlu0 %v1822_v54, %s2031_s21 }
 0x54b   :  { %v296_v55 = vpop.permute.xlu0 %295 }
 0x54c   :  { %v298_v56 = vmul.f32 %v1820_v47, %v296_v55 }
 0x54e   :  { %v299_v57 = vpack.c.bf16 %v298_v56, %v298_v56  ;;  %v764_v23 = vsel %vm763_vm3, %v2186_v33, %v298_v56 }
 0x550   :  { %v301_v58 = vrot.slane %v299_v57, 1 }
 0x552   :  { %302 = vrot.lane.b32.xlu1 %v301_v58, %s2037_s3 }
 0x5c4   :  { %v303_v59 = vpop.permute.xlu1 %302 }
 0x5c5   :  { %1665 = vmatmul.mubr.msk.bf16.vlgmr.msra.gmra.mrb[4].mxu1 %vm154_vm2, %v303_v59 }
 0x5c6   :  { %1677 = vmatpush3.bf16.msra.mxu1 %v2147_v2  ;;  %1680 = vmatprep.mubr.msk.bf16.mxu1 %vm2035_vm0, %v2034_v0 }
 0x5c7   :  { %1678 = vmatprep.subr.bf16.mxu1 %v2034_v0 }
 0x5ca   :  { %1679 = vmatpush3.bf16.msra.mxu1 %v2156_v6 }
 0x5cb   :  { %1692 = vmatprep.subr.bf16.mxu1 %v2034_v0 }
 0x698   :  { %v341_v60 = vpop.f32.mrb[4].mxu1 }
 0x699   :  { %v348_v61 = vrot.slane %v341_v60, 4  ;;  %v1666_v62 = vpop.f32.mrb[5].mxu1 }
 0x69a   :  { %v344_v63 = vpop.f32.mrb[6].mxu1 }
 0x69b   :  { %v350_v1 = vadd.f32 %v348_v61, %v2178_v11  ;;  %v1667_v3 = vpop.f32.mrb[7].mxu1 }
 0x69d   :  { %1823 = vtanh.f32 %v350_v1  ;;  %v351_v5 = vsub.f32 0.0, %v350_v1 }
 0x69f   :  { %v352_v8 = vmul.f32 1.442695, %v351_v5 }
 0x6a1   :  { %1825 = vpow2.f32 %v352_v8 }
 0x6a7   :  { %v1824_v4 = vpop.eup %1823 }
 0x6a8   :  { %362 = vrot.lane.b32.xlu0 %v1824_v4, %s2031_s21 }
 0x6ab   :  { %v1826_v9 = vpop.eup %1825 }
 0x6ac   :  { %v354_v10 = vadd.f32 1.0, %v1826_v9 }
 0x6ae   :  { %1827 = vrcp.f32 %v354_v10 }
 0x6b8   :  { %v1828_v12 = vpop.eup %1827 }
 0x6b9   :  { %v360_v17 = vmul.f32 %v1828_v12, %v358_v16 }
 0x71a   :  { %v363_v14 = vpop.permute.xlu0 %362 }
 0x71b   :  { %v365_v15 = vmul.f32 %v1828_v12, %v363_v14 }
 0x71d   :  { %367 = vrot.lane.b32.xlu1 %v365_v15, %s2037_s3 }
 0x78f   :  { %v368_v18 = vpop.permute.xlu1 %367 }
 0x790   :  { %v370_v19 = vadd.f32 %v368_v18, %v360_v17 }
 0x792   :  { %1829 = vtanh.f32 %v370_v19  ;;  %v436_v42 = vrot.slane %v370_v19, 6 }
 0x79c   :  { %v1830_v20 = vpop.eup %1829 }
 0x79d   :  { %373 = vrot.lane.b32.xlu0 %v1830_v20, %s2031_s21 }
 0x80f   :  { %v374_v21 = vpop.permute.xlu0 %373 }
 0x810   :  { %v376_v22 = vmul.f32 %v1828_v12, %v374_v21 }
 0x812   :  { %v377_v24 = vpack.c.bf16 %v376_v22, %v376_v22  ;;  %v766_v25 = vsel %vm765_vm4, %v764_v23, %v376_v22 }
 0x814   :  { %v379_v26 = vrot.slane %v377_v24, 2 }
 0x816   :  { %380 = vrot.lane.b32.xlu1 %v379_v26, %s2037_s3 }
 0x888   :  { %v381_v27 = vpop.permute.xlu1 %380 }
 0x889   :  { %1673 = vmatmul.mubr.msk.bf16.vlgmr.msra.gmra.mrb[8].mxu0 %vm154_vm2, %v381_v27 }
 0x88a   :  { %1685 = vmatpush3.bf16.msra.mxu0 %v2147_v2  ;;  %1688 = vmatprep.mubr.msk.bf16.mxu0 %vm2035_vm0, %v2034_v0 }
 0x88b   :  { %1686 = vmatprep.subr.bf16.mxu0 %v2034_v0 }
 0x88e   :  { %1687 = vmatpush3.bf16.msra.mxu0 %v2156_v6 }
 0x88f   :  { %1700 = vmatprep.subr.bf16.mxu0 %v2034_v0 }
 0x95c   :  { %v419_v28 = vpop.f32.mrb[8].mxu0 }
 0x95d   :  { %v426_v29 = vrot.slane %v419_v28, 2  ;;  %v1674_v30 = vpop.f32.mrb[9].mxu0 }
 0x95e   :  { %v422_v31 = vpop.f32.mrb[10].mxu0 }
 0x95f   :  { %v428_v32 = vadd.f32 %v426_v29, %v2178_v11  ;;  %v1675_v33 = vpop.f32.mrb[11].mxu0 }
 0x961   :  { %1831 = vtanh.f32 %v428_v32  ;;  %v429_v35 = vsub.f32 0.0, %v428_v32 }
 0x963   :  { %v430_v36 = vmul.f32 1.442695, %v429_v35 }
 0x965   :  { %1833 = vpow2.f32 %v430_v36 }
 0x96b   :  { %v1832_v34 = vpop.eup %1831 }
 0x96c   :  { %440 = vrot.lane.b32.xlu0 %v1832_v34, %s2031_s21 }
 0x96f   :  { %v1834_v37 = vpop.eup %1833 }
 0x970   :  { %v432_v38 = vadd.f32 1.0, %v1834_v37 }
 0x972   :  { %1835 = vrcp.f32 %v432_v38 }
 0x97c   :  { %v1836_v39 = vpop.eup %1835 }
 0x97d   :  { %v438_v43 = vmul.f32 %v1836_v39, %v436_v42 }
 0x9de   :  { %v441_v40 = vpop.permute.xlu0 %440 }
 0x9df   :  { %v443_v41 = vmul.f32 %v1836_v39, %v441_v40 }
 0x9e1   :  { %445 = vrot.lane.b32.xlu1 %v443_v41, %s2037_s3 }
 0xa53   :  { %v446_v44 = vpop.permute.xlu1 %445 }
 0xa54   :  { %v448_v11 = vadd.f32 %v446_v44, %v438_v43 }
 0xa56   :  { %1837 = vtanh.f32 %v448_v11  ;;  %v511_v3 = vrot.slane %v448_v11, 6 }
 0xa60   :  { %v1838_v45 = vpop.eup %1837 }
 0xa61   :  { %451 = vrot.lane.b32.xlu0 %v1838_v45, %s2031_s21 }
 0xad3   :  { %v452_v46 = vpop.permute.xlu0 %451 }
 0xad4   :  { %v454_v47 = vmul.f32 %v1836_v39, %v452_v46 }
 0xad6   :  { %v455_v48 = vpack.c.bf16 %v454_v47, %v454_v47  ;;  %v2230_v49 = vsel %vm767_vm5, %v766_v25, %v454_v47 }
 0xad8   :  { %v457_v50 = vrot.slane %v455_v48, 3 }
 0xada   :  { %458 = vrot.lane.b32.xlu1 %v457_v50, %s2037_s3 }
 0xb4c   :  { %v459_v51 = vpop.permute.xlu1 %458 }
 0xb4d   :  { %1681 = vmatmul.mubr.msk.bf16.vlgmr.msra.gmra.mrb[8].mxu1 %vm154_vm2, %v459_v51 }
 0xb4e   :  { %1693 = vmatpush3.bf16.msra.mxu1 %v2147_v2  ;;  %1696 = vmatprep.mubr.msk.bf16.mxu1 %vm2035_vm0, %v2034_v0 }
 0xb4f   :  { %1694 = vmatprep.subr.bf16.mxu1 %v2034_v0 }
 0xb52   :  { %1695 = vmatpush3.bf16.msra.mxu1 %v2156_v6 }
 0xb53   :  { %1708 = vmatprep.subr.bf16.mxu1 %v2034_v0 }
 0xc20   :  { %v497_v52 = vpop.f32.mrb[8].mxu1 }
 0xc21   :  { %v503_v53 = vadd.f32 %v497_v52, %v2180_v13  ;;  %v1682_v54 = vpop.f32.mrb[9].mxu1 }
 0xc22   :  { %v500_v55 = vpop.f32.mrb[10].mxu1 }
 0xc23   :  { %1839 = vtanh.f32 %v503_v53  ;;  %v1683_v56 = vpop.f32.mrb[11].mxu1  ;;  %v504_v58 = vsub.f32 0.0, %v503_v53 }
 0xc25   :  { %v505_v59 = vmul.f32 1.442695, %v504_v58 }
 0xc27   :  { %1841 = vpow2.f32 %v505_v59 }
 0xc2d   :  { %v1840_v57 = vpop.eup %1839 }
 0xc2e   :  { %515 = vrot.lane.b32.xlu0 %v1840_v57, %s2031_s21 }
 0xc31   :  { %v1842_v60 = vpop.eup %1841 }
 0xc32   :  { %v507_v61 = vadd.f32 1.0, %v1842_v60 }
 0xc34   :  { %1843 = vrcp.f32 %v507_v61 }
 0xc3e   :  { %v1844_v62 = vpop.eup %1843 }
 0xc3f   :  { %v513_v4 = vmul.f32 %v1844_v62, %v511_v3 }
 0xca0   :  { %v516_v63 = vpop.permute.xlu0 %515 }
 0xca1   :  { %v518_v1 = vmul.f32 %v1844_v62, %v516_v63 }
 0xca3   :  { %520 = vrot.lane.b32.xlu1 %v518_v1, %s2037_s3 }
 0xd15   :  { %v521_v5 = vpop.permute.xlu1 %520 }
 0xd16   :  { %v523_v8 = vadd.f32 %v521_v5, %v513_v4 }
 0xd18   :  { %1845 = vtanh.f32 %v523_v8  ;;  %v588_v28 = vrot.slane %v523_v8, 6 }
 0xd22   :  { %v1846_v9 = vpop.eup %1845 }
 0xd23   :  { %526 = vrot.lane.b32.xlu0 %v1846_v9, %s2031_s21 }
 0xd95   :  { %v527_v10 = vpop.permute.xlu0 %526 }
 0xd96   :  { %v2244_v12 = vmul.f32 %v1844_v62, %v527_v10 }
 0xd98   :  { %v530_v14 = vpack.c.bf16 %v2244_v12, %v2244_v12 }
 0xd9a   :  { %532 = vrot.lane.b32.xlu1 %v530_v14, %s2037_s3 }
 0xe0c   :  { %v533_v15 = vpop.permute.xlu1 %532 }
 0xe0d   :  { %1689 = vmatmul.mubr.msk.bf16.vlgmr.msra.gmra.mrb[12].mxu0 %vm154_vm2, %v533_v15 }
 0xe0e   :  { %1701 = vmatpush3.bf16.msra.mxu0 %v2147_v2  ;;  %1704 = vmatprep.mubr.msk.bf16.mxu0 %vm2035_vm0, %v2034_v0 }
 0xe0f   :  { %1702 = vmatprep.subr.bf16.mxu0 %v2034_v0 }
 0xe12   :  { %1703 = vmatpush3.bf16.msra.mxu0 %v2156_v6 }
 0xe13   :  { %1716 = vmatprep.subr.bf16.mxu0 %v2034_v0 }
 0xee0   :  { %v571_v16 = vpop.f32.mrb[12].mxu0 }
 0xee1   :  { %v578_v17 = vrot.slane %v571_v16, 6  ;;  %v1690_v18 = vpop.f32.mrb[13].mxu0 }
 0xee2   :  { %v574_v19 = vpop.f32.mrb[14].mxu0 }
 0xee3   :  { %v580_v20 = vadd.f32 %v578_v17, %v2180_v13  ;;  %v1691_v21 = vpop.f32.mrb[15].mxu0 }
 0xee5   :  { %1847 = vtanh.f32 %v580_v20  ;;  %v581_v2 = vsub.f32 0.0, %v580_v20 }
 0xee7   :  { %v582_v23 = vmul.f32 1.442695, %v581_v2  ;;  %v1801_v2 = vld [vmem:[%s2424_s4] sm:$0xff]  }
 0xee9   :  { %1849 = vpow2.f32 %v582_v23  ;;  %v2281_v23 = vld [vmem:[#allocation7] sm:$0xff]  }
 0xeef   :  { %v1848_v22 = vpop.eup %1847 }
 0xef0   :  { %592 = vrot.lane.b32.xlu0 %v1848_v22, %s2031_s21 }
 0xef3   :  { %v1850_v24 = vpop.eup %1849 }
 0xef4   :  { %v584_v25 = vadd.f32 1.0, %v1850_v24  ;;  %v1803_v24 = vld [vmem:[%s2424_s4 + $0x8] sm:$0xff]  }
 0xef6   :  { %1851 = vrcp.f32 %v584_v25  ;;  %v2287_v25 = vld [vmem:[#allocation7 + $0x8] sm:$0xff]  }
 0xf00   :  { %v1852_v6 = vpop.eup %1851 }
 0xf01   :  { %v590_v29 = vmul.f32 %v1852_v6, %v588_v28 }
 0xf62   :  { %v593_v26 = vpop.permute.xlu0 %592 }
 0xf63   :  { %v595_v27 = vmul.f32 %v1852_v6, %v593_v26 }
 0xf65   :  { %597 = vrot.lane.b32.xlu1 %v595_v27, %s2037_s3 }
 0xfd7   :  { %v598_v30 = vpop.permute.xlu1 %597 }
 0xfd8   :  { %v600_v31 = vadd.f32 %v598_v30, %v590_v29 }
 0xfda   :  { %1853 = vtanh.f32 %v600_v31  ;;  %v666_v52 = vrot.slane %v600_v31, 6 }
 0xfe4   :  { %v1854_v32 = vpop.eup %1853 }
 0xfe5   :  { %603 = vrot.lane.b32.xlu0 %v1854_v32, %s2031_s21 }
0x1057   :  { %v604_v33 = vpop.permute.xlu0 %603 }
0x1058   :  { %v606_v34 = vmul.f32 %v1852_v6, %v604_v33 }
0x105a   :  { %v607_v35 = vpack.c.bf16 %v606_v34, %v606_v34  ;;  %v769_v59 = vsel %vm763_vm3, %v2244_v12, %v606_v34 }
0x105c   :  { %v609_v36 = vrot.slane %v607_v35, 1 }
0x105e   :  { %610 = vrot.lane.b32.xlu1 %v609_v36, %s2037_s3 }
0x10d0   :  { %v611_v37 = vpop.permute.xlu1 %610 }
0x10d1   :  { %1697 = vmatmul.mubr.msk.bf16.vlgmr.msra.gmra.mrb[12].mxu1 %vm154_vm2, %v611_v37 }
0x10d2   :  { %1712 = vmatprep.mubr.msk.bf16.mxu1 %vm2035_vm0, %v2034_v0  ;;  %1709 = vmatpush3.bf16.msra.mxu1 %v1801_v2 }
0x10d3   :  { %1710 = vmatprep.subr.bf16.mxu1 %v2034_v0 }
0x10d6   :  { %1711 = vmatpush3.bf16.msra.mxu1 %v1803_v24 }
0x10d7   :  { %1724 = vmatprep.subr.bf16.mxu1 %v2034_v0 }
0x11a4   :  { %v649_v38 = vpop.f32.mrb[12].mxu1 }
0x11a5   :  { %v656_v39 = vrot.slane %v649_v38, 4  ;;  %v1698_v40 = vpop.f32.mrb[13].mxu1 }
0x11a6   :  { %v652_v41 = vpop.f32.mrb[14].mxu1 }
0x11a7   :  { %v658_v42 = vadd.f32 %v656_v39, %v2180_v13  ;;  %v1699_v43 = vpop.f32.mrb[15].mxu1 }
0x11a9   :  { %1855 = vtanh.f32 %v658_v42  ;;  %v659_v11 = vsub.f32 0.0, %v658_v42 }
0x11ab   :  { %v660_v45 = vmul.f32 1.442695, %v659_v11 }
0x11ad   :  { %1857 = vpow2.f32 %v660_v45 }
0x11b3   :  { %v1856_v44 = vpop.eup %1855 }
0x11b4   :  { %670 = vrot.lane.b32.xlu0 %v1856_v44, %s2031_s21 }
0x11b7   :  { %v1858_v46 = vpop.eup %1857 }
0x11b8   :  { %v662_v47 = vadd.f32 1.0, %v1858_v46 }
0x11ba   :  { %1859 = vrcp.f32 %v662_v47 }
0x11c4   :  { %v1860_v48 = vpop.eup %1859 }
0x11c5   :  { %v668_v53 = vmul.f32 %v1860_v48, %v666_v52 }
0x1226   :  { %v671_v50 = vpop.permute.xlu0 %670 }
0x1227   :  { %v673_v51 = vmul.f32 %v1860_v48, %v671_v50 }
0x1229   :  { %675 = vrot.lane.b32.xlu1 %v673_v51, %s2037_s3 }
0x129b   :  { %v676_v54 = vpop.permute.xlu1 %675 }
0x129c   :  { %v678_v55 = vadd.f32 %v676_v54, %v668_v53 }
0x129e   :  { %1861 = vtanh.f32 %v678_v55  ;;  %v744_v20 = vrot.slane %v678_v55, 6 }
0x12a8   :  { %v1862_v56 = vpop.eup %1861 }
0x12a9   :  { %681 = vrot.lane.b32.xlu0 %v1862_v56, %s2031_s21 }
0x131b   :  { %v682_v57 = vpop.permute.xlu0 %681 }
0x131c   :  { %v684_v58 = vmul.f32 %v1860_v48, %v682_v57 }
0x131e   :  { %v685_v60 = vpack.c.bf16 %v684_v58, %v684_v58  ;;  %v770_v61 = vsel %vm765_vm4, %v769_v59, %v684_v58 }
0x1320   :  { %v687_v62 = vrot.slane %v685_v60, 2 }
0x1322   :  { %688 = vrot.lane.b32.xlu1 %v687_v62, %s2037_s3 }
0x1394   :  { %v689_v63 = vpop.permute.xlu1 %688 }
0x1395   :  { %1705 = vmatmul.mubr.msk.bf16.vlgmr.msra.gmra.mrb[16].mxu0 %vm154_vm2, %v689_v63 }
0x1396   :  { %1720 = vmatprep.mubr.msk.bf16.mxu0 %vm2035_vm0, %v2034_v0  ;;  %1717 = vmatpush3.bf16.msra.mxu0 %v2281_v23 }
0x1397   :  { %1718 = vmatprep.subr.bf16.mxu0 %v2034_v0 }
0x139a   :  { %1719 = vmatpush3.bf16.msra.mxu0 %v2287_v25 }
0x139b   :  { %1732 = vmatprep.subr.bf16.mxu0 %v2034_v0 }
0x139d   :  { %1721 = vmatmul.mubr.bf16.vlgmr.msra.gmra.mrb[20].mxu0 %v2036_v7 }
0x139e   :  { %1733 = vmatpush3.bf16.msra.mxu0 %v2281_v23  ;;  %1736 = vmatprep.mubr.msk.bf16.mxu0 %vm2035_vm0, %v2034_v0 }
0x139f   :  { %1734 = vmatprep.subr.bf16.mxu0 %v2034_v0 }
0x13a2   :  { %1735 = vmatpush3.bf16.msra.mxu0 %v2287_v25 }
0x13a3   :  { %1748 = vmatprep.subr.bf16.mxu0 %v2034_v0 }
0x1468   :  { %v727_v1 = vpop.f32.mrb[16].mxu0 }
0x1469   :  { %v734_v3 = vrot.slane %v727_v1, 2  ;;  %v1706_v4 = vpop.f32.mrb[17].mxu0 }
0x146a   :  { %v730_v5 = vpop.f32.mrb[18].mxu0 }
0x146b   :  { %v736_v8 = vadd.f32 %v734_v3, %v2180_v13  ;;  %v1707_v9 = vpop.f32.mrb[19].mxu0 }
0x146d   :  { %1863 = vtanh.f32 %v736_v8  ;;  %v737_v12 = vsub.f32 0.0, %v736_v8 }
0x146f   :  { %v738_v14 = vmul.f32 1.442695, %v737_v12 }
0x1470   :  { %v893_v7 = vpop.f32.mrb[20].mxu0 }
0x1471   :  { %1865 = vpow2.f32 %v738_v14  ;;  %v1722_v30 = vpop.f32.mrb[21].mxu0 }
0x1472   :  { %v896_v31 = vpop.f32.mrb[22].mxu0 }
0x1473   :  { %v1723_v32 = vpop.f32.mrb[23].mxu0 }
0x1477   :  { %v1864_v10 = vpop.eup %1863 }
0x1478   :  { %748 = vrot.lane.b32.xlu0 %v1864_v10, %s2031_s21 }
0x147b   :  { %v1866_v15 = vpop.eup %1865 }
0x147c   :  { %v740_v16 = vadd.f32 1.0, %v1866_v15 }
0x147e   :  { %1867 = vrcp.f32 %v740_v16 }
0x1488   :  { %v1868_v17 = vpop.eup %1867 }
0x1489   :  { %v746_v21 = vmul.f32 %v1868_v17, %v744_v20 }
0x14ea   :  { %v749_v18 = vpop.permute.xlu0 %748 }
0x14eb   :  { %v751_v19 = vmul.f32 %v1868_v17, %v749_v18 }
0x14ed   :  { %753 = vrot.lane.b32.xlu1 %v751_v19, %s2037_s3 }
0x155f   :  { %v754_v22 = vpop.permute.xlu1 %753 }
0x1560   :  { %v756_v13 = vadd.f32 %v754_v22, %v746_v21 }
0x1562   :  { %1869 = vtanh.f32 %v756_v13 }
0x156c   :  { %v1870_v6 = vpop.eup %1869 }
0x156d   :  { %759 = vrot.lane.b32.xlu0 %v1870_v6, %s2031_s21 }
0x15df   :  { %v760_v26 = vpop.permute.xlu0 %759 }
0x15e0   :  { %v762_v27 = vmul.f32 %v1868_v17, %v760_v26 }
0x15e2   :  { %v771_v28 = vsel %vm767_vm5, %v770_v61, %v762_v27 }
0x15e3   :  { %v777_v29 = vpack.c.bf16 %v771_v28, %v2230_v49  ;;  %v1565_v49 = vld [vmem:[%s2426_s6] ss:$0 sm:$0xff] }
0x15e5   :  { %789 = vrot.lane.b32.xlu1 %v777_v29, %s2037_s3 }
0x1657   :  { %v790_v33 = vpop.permute.xlu1 %789 }
0x1658   :  { %1713 = vmatmul.mubr.msk.bf16.vlgmr.msra.gmra.mrb[16].mxu1 %vm154_vm2, %v790_v33 }
0x1659   :  { %1725 = vmatpush3.bf16.msra.mxu1 %v2281_v23  ;;  %1728 = vmatprep.mubr.msk.bf16.mxu1 %vm2035_vm0, %v2034_v0 }
0x165a   :  { %1726 = vmatprep.subr.bf16.mxu1 %v2034_v0 }
0x165d   :  { %1727 = vmatpush3.bf16.msra.mxu1 %v2287_v25 }
0x165e   :  { %1740 = vmatprep.subr.bf16.mxu1 %v2034_v0 }
0x172b   :  { %v840_v34 = vpop.f32.mrb[16].mxu1 }
0x172c   :  { %v2315_v35 = vadd.f32 %v1565_v49, %v840_v34  ;;  %v1714_v36 = vpop.f32.mrb[17].mxu1 }
0x172d   :  { %v843_v37 = vpop.f32.mrb[18].mxu1 }
0x172e   :  { %v899_v38 = vadd.f32 %v893_v7, %v2315_v35  ;;  %v2318_v39 = vadd.f32 %v1565_v49, %v843_v37  ;;  %v1715_v40 = vpop.f32.mrb[19].mxu1 }
0x1730   :  { %1871 = vtanh.f32 %v899_v38  ;;  %v900_v42 = vsub.f32 0.0, %v899_v38 }
0x1732   :  { %v901_v43 = vmul.f32 1.442695, %v900_v42 }
0x1734   :  { %1873 = vpow2.f32 %v901_v43 }
0x173a   :  { %v1872_v41 = vpop.eup %1871 }
0x173b   :  { %908 = vrot.lane.b32.xlu0 %v1872_v41, %s2031_s21 }
0x173e   :  { %v1874_v44 = vpop.eup %1873 }
0x173f   :  { %v903_v11 = vadd.f32 1.0, %v1874_v44 }
0x1741   :  { %1875 = vrcp.f32 %v903_v11 }
0x174b   :  { %v1876_v45 = vpop.eup %1875 }
0x174c   :  { %v906_v48 = vmul.f32 0.0, %v1876_v45 }
0x17ad   :  { %v909_v46 = vpop.permute.xlu0 %908 }
0x17ae   :  { %v911_v47 = vmul.f32 %v1876_v45, %v909_v46 }
0x17b0   :  { %913 = vrot.lane.b32.xlu1 %v911_v47, %s2037_s3 }
0x1822   :  { %v914_v50 = vpop.permute.xlu1 %913 }
0x1823   :  { %v916_v51 = vadd.f32 %v914_v50, %v906_v48 }
0x1825   :  { %1877 = vtanh.f32 %v916_v51  ;;  %v981_v12 = vrot.slane %v916_v51, 6 }
0x182f   :  { %v1878_v52 = vpop.eup %1877 }
0x1830   :  { %919 = vrot.lane.b32.xlu0 %v1878_v52, %s2031_s21 }
0x18a2   :  { %v920_v53 = vpop.permute.xlu0 %919 }
0x18a3   :  { %v922_v54 = vmul.f32 %v1876_v45, %v920_v53 }
0x18a5   :  { %v923_v55 = vpack.c.bf16 %v922_v54, %v922_v54 }
0x18a7   :  { %925 = vrot.lane.b32.xlu1 %v923_v55, %s2037_s3 }
0x1919   :  { %v926_v56 = vpop.permute.xlu1 %925 }
0x191a   :  { %1729 = vmatmul.mubr.msk.bf16.vlgmr.msra.gmra.mrb[20].mxu1 %vm154_vm2, %v926_v56 }
0x191b   :  { %1741 = vmatpush3.bf16.msra.mxu1 %v2281_v23  ;;  %1744 = vmatprep.mubr.msk.bf16.mxu1 %vm2035_vm0, %v2034_v0 }
0x191c   :  { %1742 = vmatprep.subr.bf16.mxu1 %v2034_v0 }
0x191f   :  { %1743 = vmatpush3.bf16.msra.mxu1 %v2287_v25 }
0x1920   :  { %1756 = vmatprep.subr.bf16.mxu1 %v2034_v0 }
0x19ed   :  { %v964_v57 = vpop.f32.mrb[20].mxu1 }
0x19ee   :  { %v971_v58 = vrot.slane %v964_v57, 6  ;;  %v1730_v59 = vpop.f32.mrb[21].mxu1 }
0x19ef   :  { %v967_v60 = vpop.f32.mrb[22].mxu1 }
0x19f0   :  { %v973_v61 = vadd.f32 %v971_v58, %v2315_v35  ;;  %v1731_v62 = vpop.f32.mrb[23].mxu1 }
0x19f2   :  { %1879 = vtanh.f32 %v973_v61  ;;  %v974_v1 = vsub.f32 0.0, %v973_v61 }
0x19f4   :  { %v975_v3 = vmul.f32 1.442695, %v974_v1 }
0x19f6   :  { %1881 = vpow2.f32 %v975_v3 }
0x19fc   :  { %v1880_v63 = vpop.eup %1879 }
0x19fd   :  { %985 = vrot.lane.b32.xlu0 %v1880_v63, %s2031_s21 }
0x1a00   :  { %v1882_v4 = vpop.eup %1881 }
0x1a01   :  { %v977_v5 = vadd.f32 1.0, %v1882_v4 }
0x1a03   :  { %1883 = vrcp.f32 %v977_v5 }
0x1a0d   :  { %v1884_v8 = vpop.eup %1883 }
0x1a0e   :  { %v983_v14 = vmul.f32 %v1884_v8, %v981_v12 }
0x1a6f   :  { %v986_v9 = vpop.permute.xlu0 %985 }
0x1a70   :  { %v988_v10 = vmul.f32 %v1884_v8, %v986_v9 }
0x1a72   :  { %990 = vrot.lane.b32.xlu1 %v988_v10, %s2037_s3 }
0x1ae4   :  { %v991_v15 = vpop.permute.xlu1 %990 }
0x1ae5   :  { %v993_v16 = vadd.f32 %v991_v15, %v983_v14 }
0x1ae7   :  { %1885 = vtanh.f32 %v993_v16  ;;  %v1059_v34 = vrot.slane %v993_v16, 6 }
0x1af1   :  { %v1886_v17 = vpop.eup %1885 }
0x1af2   :  { %996 = vrot.lane.b32.xlu0 %v1886_v17, %s2031_s21 }
0x1b64   :  { %v997_v18 = vpop.permute.xlu0 %996 }
0x1b65   :  { %v999_v19 = vmul.f32 %v1884_v8, %v997_v18 }
0x1b67   :  { %v1000_v20 = vpack.c.bf16 %v999_v19, %v999_v19 }
0x1b69   :  { %v1002_v21 = vrot.slane %v1000_v20, 1 }
0x1b6b   :  { %1003 = vrot.lane.b32.xlu1 %v1002_v21, %s2037_s3 }
0x1bdd   :  { %v1004_v22 = vpop.permute.xlu1 %1003 }
0x1bde   :  { %1737 = vmatmul.mubr.msk.bf16.vlgmr.msra.gmra.mrb[24].mxu0 %vm154_vm2, %v1004_v22 }
0x1bdf   :  { %1749 = vmatpush3.bf16.msra.mxu0 %v2281_v23  ;;  %1752 = vmatprep.mubr.msk.bf16.mxu0 %vm2035_vm0, %v2034_v0 }
0x1be0   :  { %1750 = vmatprep.subr.bf16.mxu0 %v2034_v0 }
0x1be3   :  { %1751 = vmatpush3.bf16.msra.mxu0 %v2287_v25 }
0x1be4   :  { %1764 = vmatprep.subr.bf16.mxu0 %v2034_v0 }
0x1cb1   :  { %v1042_v13 = vpop.f32.mrb[24].mxu0 }
0x1cb2   :  { %v1049_v2 = vrot.slane %v1042_v13, 4  ;;  %v1738_v24 = vpop.f32.mrb[25].mxu0 }
0x1cb3   :  { %v1045_v6 = vpop.f32.mrb[26].mxu0 }
0x1cb4   :  { %v1051_v26 = vadd.f32 %v1049_v2, %v2315_v35  ;;  %v1739_v27 = vpop.f32.mrb[27].mxu0 }
0x1cb6   :  { %1887 = vtanh.f32 %v1051_v26  ;;  %v1052_v29 = vsub.f32 0.0, %v1051_v26 }
0x1cb8   :  { %v1053_v7 = vmul.f32 1.442695, %v1052_v29 }
0x1cba   :  { %1889 = vpow2.f32 %v1053_v7 }
0x1cc0   :  { %v1888_v28 = vpop.eup %1887 }
0x1cc1   :  { %1063 = vrot.lane.b32.xlu0 %v1888_v28, %s2031_s21 }
0x1cc4   :  { %v1890_v30 = vpop.eup %1889 }
0x1cc5   :  { %v1055_v31 = vadd.f32 1.0, %v1890_v30 }
0x1cc7   :  { %1891 = vrcp.f32 %v1055_v31 }
0x1cd1   :  { %v1892_v32 = vpop.eup %1891 }
0x1cd2   :  { %v1061_v36 = vmul.f32 %v1892_v32, %v1059_v34 }
0x1d33   :  { %v1064_v33 = vpop.permute.xlu0 %1063 }
0x1d34   :  { %v1066_v49 = vmul.f32 %v1892_v32, %v1064_v33 }
0x1d36   :  { %1068 = vrot.lane.b32.xlu1 %v1066_v49, %s2037_s3 }
0x1da8   :  { %v1069_v37 = vpop.permute.xlu1 %1068 }
0x1da9   :  { %v1071_v38 = vadd.f32 %v1069_v37, %v1061_v36 }
0x1dab   :  { %1893 = vtanh.f32 %v1071_v38  ;;  %v1137_v60 = vrot.slane %v1071_v38, 6 }
0x1db5   :  { %v1894_v40 = vpop.eup %1893 }
0x1db6   :  { %1074 = vrot.lane.b32.xlu0 %v1894_v40, %s2031_s21 }
0x1e28   :  { %v1075_v41 = vpop.permute.xlu0 %1074 }
0x1e29   :  { %v1077_v42 = vmul.f32 %v1892_v32, %v1075_v41 }
0x1e2b   :  { %v1078_v43 = vpack.c.bf16 %v1077_v42, %v1077_v42 }
0x1e2d   :  { %v1080_v44 = vrot.slane %v1078_v43, 2 }
0x1e2f   :  { %1081 = vrot.lane.b32.xlu1 %v1080_v44, %s2037_s3 }
0x1ea1   :  { %v1082_v11 = vpop.permute.xlu1 %1081 }
0x1ea2   :  { %1745 = vmatmul.mubr.msk.bf16.vlgmr.msra.gmra.mrb[24].mxu1 %vm154_vm2, %v1082_v11 }
0x1ea3   :  { %1757 = vmatpush3.bf16.msra.mxu1 %v2281_v23  ;;  %1760 = vmatprep.mubr.msk.bf16.mxu1 %vm2035_vm0, %v2034_v0 }
0x1ea4   :  { %1758 = vmatprep.subr.bf16.mxu1 %v2034_v0 }
0x1ea7   :  { %1759 = vmatpush3.bf16.msra.mxu1 %v2287_v25 }
0x1ea8   :  { %1772 = vmatprep.subr.bf16.mxu1 %v2034_v0 }
0x1f75   :  { %v1120_v45 = vpop.f32.mrb[24].mxu1 }
0x1f76   :  { %v1127_v46 = vrot.slane %v1120_v45, 2  ;;  %v1746_v47 = vpop.f32.mrb[25].mxu1 }
0x1f77   :  { %v1123_v48 = vpop.f32.mrb[26].mxu1 }
0x1f78   :  { %v1129_v50 = vadd.f32 %v1127_v46, %v2315_v35  ;;  %v1747_v51 = vpop.f32.mrb[27].mxu1 }
0x1f7a   :  { %1895 = vtanh.f32 %v1129_v50  ;;  %v1130_v53 = vsub.f32 0.0, %v1129_v50 }
0x1f7c   :  { %v1131_v54 = vmul.f32 1.442695, %v1130_v53 }
0x1f7e   :  { %1897 = vpow2.f32 %v1131_v54 }
0x1f84   :  { %v1896_v52 = vpop.eup %1895 }
0x1f85   :  { %1141 = vrot.lane.b32.xlu0 %v1896_v52, %s2031_s21 }
0x1f88   :  { %v1898_v55 = vpop.eup %1897 }
0x1f89   :  { %v1133_v56 = vadd.f32 1.0, %v1898_v55 }
0x1f8b   :  { %1899 = vrcp.f32 %v1133_v56 }
0x1f95   :  { %v1900_v57 = vpop.eup %1899 }
0x1f96   :  { %v1139_v61 = vmul.f32 %v1900_v57, %v1137_v60 }
0x1ff7   :  { %v1142_v58 = vpop.permute.xlu0 %1141 }
0x1ff8   :  { %v1144_v59 = vmul.f32 %v1900_v57, %v1142_v58 }
0x1ffa   :  { %1146 = vrot.lane.b32.xlu1 %v1144_v59, %s2037_s3 }
0x206c   :  { %v1147_v62 = vpop.permute.xlu1 %1146 }
0x206d   :  { %v1149_v35 = vadd.f32 %v1147_v62, %v1139_v61 }
0x206f   :  { %1901 = vtanh.f32 %v1149_v35  ;;  %v1212_v2 = vrot.slane %v1149_v35, 6 }
0x2079   :  { %v1902_v63 = vpop.eup %1901 }
0x207a   :  { %1152 = vrot.lane.b32.xlu0 %v1902_v63, %s2031_s21 }
0x20ec   :  { %v1153_v1 = vpop.permute.xlu0 %1152 }
0x20ed   :  { %v1155_v3 = vmul.f32 %v1900_v57, %v1153_v1 }
0x20ef   :  { %v1156_v4 = vpack.c.bf16 %v1155_v3, %v1155_v3 }
0x20f1   :  { %v1158_v5 = vrot.slane %v1156_v4, 3 }
0x20f3   :  { %1159 = vrot.lane.b32.xlu1 %v1158_v5, %s2037_s3 }
0x2165   :  { %v1160_v8 = vpop.permute.xlu1 %1159 }
0x2166   :  { %1753 = vmatmul.mubr.msk.bf16.vlgmr.msra.gmra.mrb[28].mxu0 %vm154_vm2, %v1160_v8 }
0x2167   :  { %1765 = vmatpush3.bf16.msra.mxu0 %v2281_v23  ;;  %1768 = vmatprep.mubr.msk.bf16.mxu0 %vm2035_vm0, %v2034_v0 }
0x2168   :  { %1766 = vmatprep.subr.bf16.mxu0 %v2034_v0 }
0x216b   :  { %1767 = vmatpush3.bf16.msra.mxu0 %v2287_v25 }
0x216c   :  { %1780 = vmatprep.subr.bf16.mxu0 %v2034_v0 }
0x2239   :  { %v1198_v9 = vpop.f32.mrb[28].mxu0 }
0x223a   :  { %v1204_v10 = vadd.f32 %v1198_v9, %v2318_v39  ;;  %v1754_v12 = vpop.f32.mrb[29].mxu0 }
0x223b   :  { %v1201_v14 = vpop.f32.mrb[30].mxu0 }
0x223c   :  { %1903 = vtanh.f32 %v1204_v10  ;;  %v1755_v15 = vpop.f32.mrb[31].mxu0  ;;  %v1205_v17 = vsub.f32 0.0, %v1204_v10 }
0x223e   :  { %v1206_v18 = vmul.f32 1.442695, %v1205_v17 }
0x2240   :  { %1905 = vpow2.f32 %v1206_v18 }
0x2246   :  { %v1904_v16 = vpop.eup %1903 }
0x2247   :  { %1216 = vrot.lane.b32.xlu0 %v1904_v16, %s2031_s21 }
0x224a   :  { %v1906_v19 = vpop.eup %1905 }
0x224b   :  { %v1208_v20 = vadd.f32 1.0, %v1906_v19 }
0x224d   :  { %1907 = vrcp.f32 %v1208_v20 }
0x2257   :  { %v1908_v21 = vpop.eup %1907 }
0x2258   :  { %v1214_v24 = vmul.f32 %v1908_v21, %v1212_v2 }
0x22b9   :  { %v1217_v22 = vpop.permute.xlu0 %1216 }
0x22ba   :  { %v1219_v13 = vmul.f32 %v1908_v21, %v1217_v22 }
0x22bc   :  { %1221 = vrot.lane.b32.xlu1 %v1219_v13, %s2037_s3 }
0x232e   :  { %v1222_v6 = vpop.permute.xlu1 %1221 }
0x232f   :  { %v1224_v26 = vadd.f32 %v1222_v6, %v1214_v24 }
0x2331   :  { %1909 = vtanh.f32 %v1224_v26  ;;  %v1289_v44 = vrot.slane %v1224_v26, 6 }
0x233b   :  { %v1910_v27 = vpop.eup %1909 }
0x233c   :  { %1227 = vrot.lane.b32.xlu0 %v1910_v27, %s2031_s21 }
0x23ae   :  { %v1228_v28 = vpop.permute.xlu0 %1227 }
0x23af   :  { %v1230_v29 = vmul.f32 %v1908_v21, %v1228_v28 }
0x23b1   :  { %v1231_v7 = vpack.c.bf16 %v1230_v29, %v1230_v29 }
0x23b3   :  { %1233 = vrot.lane.b32.xlu1 %v1231_v7, %s2037_s3 }
0x2425   :  { %v1234_v30 = vpop.permute.xlu1 %1233 }
0x2426   :  { %1761 = vmatmul.mubr.msk.bf16.vlgmr.msra.gmra.mrb[28].mxu1 %vm154_vm2, %v1234_v30 }
0x2427   :  { %1773 = vmatpush3.bf16.msra.mxu1 %v2281_v23  ;;  %1776 = vmatprep.mubr.msk.bf16.mxu1 %vm2035_vm0, %v2034_v0 }
0x2428   :  { %1774 = vmatprep.subr.bf16.mxu1 %v2034_v0 }
0x242b   :  { %1775 = vmatpush3.bf16.msra.mxu1 %v2287_v25 }
0x24f9   :  { %v1272_v31 = vpop.f32.mrb[28].mxu1 }
0x24fa   :  { %v1279_v32 = vrot.slane %v1272_v31, 6  ;;  %v1762_v33 = vpop.f32.mrb[29].mxu1 }
0x24fb   :  { %v1275_v49 = vpop.f32.mrb[30].mxu1 }
0x24fc   :  { %v1281_v34 = vadd.f32 %v1279_v32, %v2318_v39  ;;  %v1763_v36 = vpop.f32.mrb[31].mxu1  ;;  %v1805_v49 = vld [vmem:[%s2427_s7] sm:$0xff]  }
0x24fe   :  { %1911 = vtanh.f32 %v1281_v34  ;;  %v1282_v38 = vsub.f32 0.0, %v1281_v34  ;;  %v1806_v34 = vld [vmem:[%s2427_s7 + $0x8] sm:$0xff]   ;;  %s2038_s7 = smov [#allocation8]  }
0x24ff   :  { %s1543_s18 = sshll.u32 %s2038_s7, 4  ;;  %s1544_s18 = int_to_ptr.vmem [resolvable:$true] %s1543_s18 }
0x2500   :  { %v1283_v23 = vmul.f32 1.442695, %v1282_v38  ;;  %p2006_p11 = scmp.lt.s32.totalorder %s1544_s18, %s1544_s18 }
0x2502   :  { %1913 = vpow2.f32 %v1283_v23 }
0x2508   :  { %v1912_v37 = vpop.eup %1911 }
0x2509   :  { %1293 = vrot.lane.b32.xlu0 %v1912_v37, %s2031_s21 }
0x250c   :  { %v1914_v40 = vpop.eup %1913 }
0x250d   :  { %v1285_v41 = vadd.f32 1.0, %v1914_v40 }
0x250f   :  { %1915 = vrcp.f32 %v1285_v41 }
0x2519   :  { %v1916_v42 = vpop.eup %1915 }
0x251a   :  { %v1291_v11 = vmul.f32 %v1916_v42, %v1289_v44 }
0x257b   :  { %v1294_v43 = vpop.permute.xlu0 %1293 }
0x257c   :  { %v1296_v25 = vmul.f32 %v1916_v42, %v1294_v43 }
0x257e   :  { %1298 = vrot.lane.b32.xlu1 %v1296_v25, %s2037_s3 }
0x25f0   :  { %v1299_v45 = vpop.permute.xlu1 %1298 }
0x25f1   :  { %v1301_v46 = vadd.f32 %v1299_v45, %v1291_v11 }
0x25f3   :  { %1917 = vtanh.f32 %v1301_v46  ;;  %v1367_v5 = vrot.slane %v1301_v46, 6 }
0x25fd   :  { %v1918_v47 = vpop.eup %1917 }
0x25fe   :  { %1304 = vrot.lane.b32.xlu0 %v1918_v47, %s2031_s21 }
0x2670   :  { %v1305_v48 = vpop.permute.xlu0 %1304 }
0x2671   :  { %v1307_v50 = vmul.f32 %v1916_v42, %v1305_v48  ;;  %v1578_v42 = vld [vmem:[%s2428_s8] ss:$0 sm:$0xff] }
0x2673   :  { %v1308_v51 = vpack.c.bf16 %v1307_v50, %v1307_v50 }
0x2675   :  { %v1310_v52 = vrot.slane %v1308_v51, 1 }
0x2677   :  { %1311 = vrot.lane.b32.xlu1 %v1310_v52, %s2037_s3 }
0x26e9   :  { %v1312_v53 = vpop.permute.xlu1 %1311 }
0x26ea   :  { %1769 = vmatmul.mubr.msk.bf16.vlgmr.msra.gmra.mrb[32].mxu0 %vm154_vm2, %v1312_v53 }
0x26eb   :  { %1784 = vmatprep.mubr.msk.bf16.mxu0 %vm2035_vm0, %v2034_v0  ;;  %1781 = vmatpush3.bf16.msra.mxu0 %v1805_v49 }
0x26ec   :  { %1782 = vmatprep.subr.bf16.mxu0 %v2034_v0 }
0x26ef   :  { %1783 = vmatpush3.bf16.msra.mxu0 %v1806_v34 }
0x27bd   :  { %v1350_v54 = vpop.f32.mrb[32].mxu0 }
0x27be   :  { %v1357_v55 = vrot.slane %v1350_v54, 4  ;;  %v1770_v56 = vpop.f32.mrb[33].mxu0 }
0x27bf   :  { %v1353_v57 = vpop.f32.mrb[34].mxu0 }
0x27c0   :  { %v1359_v58 = vadd.f32 %v1357_v55, %v2318_v39  ;;  %v1771_v59 = vpop.f32.mrb[35].mxu0 }
0x27c2   :  { %1919 = vtanh.f32 %v1359_v58  ;;  %v1360_v61 = vsub.f32 0.0, %v1359_v58 }
0x27c4   :  { %v1361_v62 = vmul.f32 1.442695, %v1360_v61 }
0x27c6   :  { %1921 = vpow2.f32 %v1361_v62 }
0x27cc   :  { %v1920_v60 = vpop.eup %1919 }
0x27cd   :  { %1371 = vrot.lane.b32.xlu0 %v1920_v60, %s2031_s21 }
0x27d0   :  { %v1922_v35 = vpop.eup %1921 }
0x27d1   :  { %v1363_v63 = vadd.f32 1.0, %v1922_v35 }
0x27d3   :  { %1923 = vrcp.f32 %v1363_v63 }
0x27dd   :  { %v1924_v1 = vpop.eup %1923 }
0x27de   :  { %v1369_v8 = vmul.f32 %v1924_v1, %v1367_v5 }
0x283f   :  { %v1372_v3 = vpop.permute.xlu0 %1371 }
0x2840   :  { %v1374_v4 = vmul.f32 %v1924_v1, %v1372_v3 }
0x2842   :  { %1376 = vrot.lane.b32.xlu1 %v1374_v4, %s2037_s3 }
0x28b4   :  { %v1377_v9 = vpop.permute.xlu1 %1376 }
0x28b5   :  { %v1379_v10 = vadd.f32 %v1377_v9, %v1369_v8 }
0x28b7   :  { %1925 = vtanh.f32 %v1379_v10  ;;  %v1445_v31 = vrot.slane %v1379_v10, 6 }
0x28c1   :  { %v1926_v12 = vpop.eup %1925 }
0x28c2   :  { %1382 = vrot.lane.b32.xlu0 %v1926_v12, %s2031_s21 }
0x2934   :  { %v1383_v14 = vpop.permute.xlu0 %1382 }
0x2935   :  { %v1385_v15 = vmul.f32 %v1924_v1, %v1383_v14 }
0x2937   :  { %v1386_v16 = vpack.c.bf16 %v1385_v15, %v1385_v15 }
0x2939   :  { %v1388_v17 = vrot.slane %v1386_v16, 2 }
0x293b   :  { %1389 = vrot.lane.b32.xlu1 %v1388_v17, %s2037_s3 }
0x29ad   :  { %v1390_v18 = vpop.permute.xlu1 %1389 }
0x29ae   :  { %1777 = vmatmul.mubr.msk.bf16.vlgmr.msra.gmra.mrb[32].mxu1 %vm154_vm2, %v1390_v18 }
0x2a81   :  { %v1428_v19 = vpop.f32.mrb[32].mxu1 }
0x2a82   :  { %v1435_v20 = vrot.slane %v1428_v19, 2  ;;  %v1778_v21 = vpop.f32.mrb[33].mxu1 }
0x2a83   :  { %v1431_v22 = vpop.f32.mrb[34].mxu1 }
0x2a84   :  { %v1437_v13 = vadd.f32 %v1435_v20, %v2318_v39  ;;  %v1779_v2 = vpop.f32.mrb[35].mxu1 }
0x2a86   :  { %1927 = vtanh.f32 %v1437_v13  ;;  %v1438_v6 = vsub.f32 0.0, %v1437_v13 }
0x2a88   :  { %v1439_v26 = vmul.f32 1.442695, %v1438_v6 }
0x2a8a   :  { %1929 = vpow2.f32 %v1439_v26 }
0x2a90   :  { %v1928_v24 = vpop.eup %1927 }
0x2a91   :  { %1449 = vrot.lane.b32.xlu0 %v1928_v24, %s2031_s21 }
0x2a94   :  { %v1930_v27 = vpop.eup %1929 }
0x2a95   :  { %v1441_v28 = vadd.f32 1.0, %v1930_v27 }
0x2a97   :  { %1931 = vrcp.f32 %v1441_v28 }
0x2aa1   :  { %v1932_v29 = vpop.eup %1931 }
0x2aa2   :  { %v1447_v32 = vmul.f32 %v1932_v29, %v1445_v31 }
0x2b03   :  { %v1450_v7 = vpop.permute.xlu0 %1449 }
0x2b04   :  { %v1452_v30 = vmul.f32 %v1932_v29, %v1450_v7 }
0x2b06   :  { %1454 = vrot.lane.b32.xlu1 %v1452_v30, %s2037_s3 }
0x2b78   :  { %v1455_v33 = vpop.permute.xlu1 %1454 }
0x2b79   :  { %v1457_v39 = vadd.f32 %v1455_v33, %v1447_v32 }
0x2b7b   :  { %1933 = vtanh.f32 %v1457_v39 }
0x2b85   :  { %v1934_v36 = vpop.eup %1933 }
0x2b86   :  { %1460 = vrot.lane.b32.xlu0 %v1934_v36, %s2031_s21  ;;  %s2001_s21 = scalar_lea.vmem %s1544_s18, 32 }
0x2b87   :  { %p2002_p10 = scmp.ne.s32.totalorder %s1544_s18, %s2001_s21  ;;  %p2007_p12 = scmp.lt.s32.totalorder %s2001_s21, %s2001_s21 }
0x2b89   :  { %p2008_p13 = por %p2007_p12, %p2006_p11 }
0x2b8b   :  { %p2009_p0 = pnand %p2008_p13, %p2002_p10 }
0x2bf8   :  { %v1461_v37 = vpop.permute.xlu0 %1460 }
0x2bf9   :  { %v1463_v38 = vmul.f32 %v1932_v29, %v1461_v37 }
0x2bfb   :  { %v1464_v23 = vpack.c.bf16 %v1463_v38, %v1463_v38 }
0x2bfd   :  { %v1477_v40 = vrot.slane %v1464_v23, 3 }
0x2bff   :  { %1478 = vrot.lane.b32.xlu1 %v1477_v40, %s2037_s3 }
0x2c71   :  { %v1479_v41 = vpop.permute.xlu1 %1478 }
0x2c72   :  { %1785 = vmatmul.mubr.msk.bf16.vlgmr.msra.gmra.mrb[36].mxu0 %vm154_vm2, %v1479_v41 }
0x2d45   :  { %v1529_v0 = vpop.f32.mrb[36].mxu0 }
0x2d46   :  { %v1530_v43 = vadd.f32 %v1578_v42, %v1529_v0  ;;  %v1786_v25 = vpop.f32.mrb[37].mxu0 }
0x2d47   :  { %v1532_v44 = vpop.f32.mrb[38].mxu0 }
0x2d48   :  { %v1787_v11 = vpop.f32.mrb[39].mxu0  ;;  %1536 = vst.msk [vmem:[#allocation8] sm:$0x3] %vm1535_vm6, %v1530_v43 }
0x2d49   :  { %2012 = shalt.err (!%p2009_p0)
}
0x2d4a   :  { %s2013_s8 = scalar_lea.hbm %s2429_s9, 32 }
0x2d4b   :  { %p2014_p1 = scmp.ne.s32.totalorder %s2429_s9, %s2013_s8  ;;  %p2017_p2 = scmp.lt.u32.totalorder %s2013_s8, %s2429_s9 }
0x2d4d   :  { %p2019_p3 = pnand %p2017_p2, %p2014_p1 }
0x2d4f   :  { %2022 = shalt.err (!%p2019_p3)
}
0x2d50   :  { %1546 = dma.vmem_to_hbm [thread:$0]  %s1544_s18, 32, %s2429_s9, [#allocation4]  }
0x2d51   :  { %2027 = dma.done.wait [#allocation4], 32  }
0x2d52   :  { %2028 = vsyncadd [#allocation4], 4294967264 }
0x2d53   :  { %1550 = vsyncpa [#allocation3], 1 }
0x2d54   :  { %1551 = vsyncpa [#allocation6], 1 }
0x2d55   :  { %1552 = vsyncpa [#allocation4], 1 }

</bundles_post_ra>
